<compile_context>
chip_gen: v7x
topology: tpu7x:2x2x1
jax: 0.10.0
libtpu: 0.0.40
codegen_flags: <defaults>
</compile_context>

<pallas_src>
import math
import numpy as np
import jax
import jax.numpy as jnp
from jax import lax
from jax.experimental import pallas as pl
from jax.experimental.pallas import tpu as pltpu

# ---- static problem sizes (small, consistent with the module) ----------------
B, T, D = 2, 8, 32          # batch, time, model size (in_size == size == D)
H, DK = 4, 8                # heads, head dim (D = H * DK)
FFN = 64                    # feed-forward hidden units
K = 5                       # FSMN depthwise conv kernel size (sanm_shift = 0)
EPS = 1e-12                 # funasr LayerNorm eps
NEG = -1e30                 # finite, dtype-safe large-negative for score masking
LEFT = (K - 1) // 2         # FSMN left padding (sanm_shift = 0)
RIGHT = K - 1 - LEFT
BT = B * T
BH = B * H

LANE = 128
ROWS_PER = LANE // D        # rows of (BT, D) packed per 128-lane output row
assert D * ROWS_PER == LANE and BT % ROWS_PER == 0
OUT_ROWS = BT // ROWS_PER   # lane-dense output slab is (OUT_ROWS, 128)


def _layer_norm(x, g, b):
    mean = jnp.mean(x, axis=-1, keepdims=True)
    var = jnp.mean(jnp.square(x - mean), axis=-1, keepdims=True)
    return (x - mean) * lax.rsqrt(var + EPS) * g + b


def encoder_layer_kernel(x_ref, mask_col_ref, key_mask_ref,
                         ln1_g_ref, ln1_b_ref,
                         wq_ref, bq_ref, wk_ref, bk_ref, wv_ref, bv_ref,
                         fsmn_w_ref,
                         wout_ref, bout_ref,
                         ln2_g_ref, ln2_b_ref,
                         w1_ref, b1_ref,
                         w2_ref, b2_ref,
                         out_ref):
    x = x_ref[...].astype(jnp.float32)        # (B*T, D) whole batch, flat rows
    mask_col = mask_col_ref[...]              # (B*T, 1) per-frame pad mask
    key_mask = key_mask_ref[...]              # (B*H, 1, T) key pad mask per (b,h)

    # ---- LayerNorm 1 (normalize_before) ----
    xn = _layer_norm(x, ln1_g_ref[...], ln1_b_ref[...])

    # ---- per-head Q/K/V projections --------------------------------------
    # Weights are pre-split per head (H, D, DK): heads never sit on the lane
    # axis, so no sub-128-lane column slicing.  The 1/sqrt(DK) scale is folded
    # into wq/bq at param-prep time.
    q_heads = [jnp.dot(xn, wq_ref[h], preferred_element_type=jnp.float32) + bq_ref[h]
               for h in range(H)]             # each (BT, DK)
    k_heads = [jnp.dot(xn, wk_ref[h], preferred_element_type=jnp.float32) + bk_ref[h]
               for h in range(H)]
    v_heads = [jnp.dot(xn, wv_ref[h], preferred_element_type=jnp.float32) + bv_ref[h]
               for h in range(H)]

    # v in (BT, D) layout for the FSMN depthwise conv (single lane concat).
    v_full = jnp.concatenate(v_heads, axis=1)                      # (BT, D)

    # ---- FSMN memory block: depthwise conv over time on masked v ----------
    # One globally zero-padded slab + K static sublane slices; batch-boundary
    # leakage is killed with cheap iota-based masks (VPU, under matmul slack).
    vm = v_full * mask_col
    slab = jnp.concatenate([jnp.zeros((LEFT, D), jnp.float32), vm,
                            jnp.zeros((RIGHT, D), jnp.float32)], axis=0)  # (BT+K-1, D)
    t_idx = lax.broadcasted_iota(jnp.int32, (BT, 1), 0) % T        # time within batch
    conv = jnp.zeros((BT, D), jnp.float32)
    for kk in range(K):                       # K = 5, static, unrolled
        d_off = kk - LEFT
        tap = slab[kk:kk + BT, :]
        if d_off > 0:                         # don't read into the next batch
            tap = tap * (t_idx < T - d_off).astype(jnp.float32)
        elif d_off < 0:                       # don't read into the previous batch
            tap = tap * (t_idx >= -d_off).astype(jnp.float32)
        conv = conv + tap * fsmn_w_ref[kk:kk + 1, :]
    fsmn = (conv + vm) * mask_col             # dropout = identity at inference

    # ---- multi-head self-attention: (b, h) folded onto a leading batch axis --
    def bh_stack(heads):                      # list of H (BT, DK) -> (B*H, T, DK)
        return jnp.stack([heads[h][b * T:(b + 1) * T, :]           # 8-sublane-aligned slices
                          for b in range(B) for h in range(H)], axis=0)

    q3 = bh_stack(q_heads)                    # (BH, T, DK), q already pre-scaled
    k3 = bh_stack(k_heads)
    v3 = bh_stack(v_heads)

    scores = jnp.einsum('bqd,bkd->bqk', q3, k3,
                        preferred_element_type=jnp.float32)        # (BH, T, T)
    scores = jnp.where(key_mask > 0.0, scores, NEG)
    m = jnp.max(scores, axis=-1, keepdims=True)
    e = jnp.exp(scores - m)
    attn = e / jnp.sum(e, axis=-1, keepdims=True)                  # exact softmax
    attn = attn * key_mask                    # zero masked keys (matches reference)
    ctx = jnp.einsum('bqk,bkd->bqd', attn, v3,
                     preferred_element_type=jnp.float32)           # (BH, T, DK)

    # Head merge folded into the output projection: per-head matmuls summed,
    # so no lane-axis concatenation of DK-wide blocks.
    att_out = bout_ref[...]                   # (1, D), broadcasts on first add
    for h in range(H):
        ctx_h = jnp.concatenate([ctx[b * H + h] for b in range(B)], axis=0)  # (BT, DK)
        att_out = att_out + jnp.dot(ctx_h, wout_ref[h],
                                    preferred_element_type=jnp.float32)

    # ---- residual 1 (in_size == size) ----
    x1 = x + att_out + fsmn

    # ---- LayerNorm 2 + position-wise feed-forward + residual 2 ----
    xn2 = _layer_norm(x1, ln2_g_ref[...], ln2_b_ref[...])
    h1 = jnp.maximum(
        jnp.dot(xn2, w1_ref[...], preferred_element_type=jnp.float32) + b1_ref[...],
        0.0)
    ff = jnp.dot(h1, w2_ref[...], preferred_element_type=jnp.float32) + b2_ref[...]
    y = x1 + ff                               # (BT, D)

    # ---- lane-dense output store: pack ROWS_PER rows per 128-lane output row.
    # Built with aligned row slices + concats (guaranteed lowering); at
    # production D >= 128 this degenerates to a plain full-lane store.
    packed_rows = []
    for r in range(OUT_ROWS):
        packed_rows.append(jnp.concatenate(
            [y[r * ROWS_PER + s: r * ROWS_PER + s + 1, :] for s in range(ROWS_PER)],
            axis=1))                          # (1, 128)
    out_ref[...] = jnp.concatenate(packed_rows, axis=0).astype(out_ref.dtype)


def encoder_layer_sanm(x, mask, kernel_params):
    """x: (B,T,D) f32, mask: (B,1,T) f32. Returns (B,T,D) f32 (mask unchanged)."""
    # wrapper-side layout plumbing (glue only, all O(B*T)):
    x2d = x.reshape(BT, D)
    mask_col2d = jnp.transpose(mask, (0, 2, 1)).reshape(BT, 1)
    key_mask = jnp.repeat(mask, H, axis=0)                          # (B*H, 1, T)

    def full(shape):
        nd = len(shape)
        return pl.BlockSpec(shape, lambda i, nd=nd: (0,) * nd)

    in_specs = [
        full((BT, D)),          # x (flat rows)
        full((BT, 1)),          # frame pad mask (column form)
        full((BH, 1, T)),       # key pad mask per (b, h)
        full((1, D)),           # ln1 gamma
        full((1, D)),           # ln1 beta
        full((H, D, DK)),       # Wq per head (pre-scaled)
        full((H, 1, DK)),       # bq per head (pre-scaled)
        full((H, D, DK)),       # Wk per head
        full((H, 1, DK)),       # bk per head
        full((H, D, DK)),       # Wv per head
        full((H, 1, DK)),       # bv per head
        full((K, D)),           # fsmn depthwise weights (2-D)
        full((H, DK, D)),       # W_out split per head
        full((1, D)),           # b_out
        full((1, D)),           # ln2 gamma
        full((1, D)),           # ln2 beta
        full((D, FFN)),         # W1^T
        full((1, FFN)),         # b1
        full((FFN, D)),         # W2^T
        full((1, D)),           # b2
    ]

    out_slab = pl.pallas_call(
        encoder_layer_kernel,
        out_shape=jax.ShapeDtypeStruct((OUT_ROWS, LANE), jnp.float32),
        grid=(1,),                                   # single invocation, batch folded in
        in_specs=in_specs,
        out_specs=full((OUT_ROWS, LANE)),
        compiler_params=pltpu.CompilerParams(dimension_semantics=("arbitrary",)),
    )(x2d, mask_col2d, key_mask, *kernel_params)
    return out_slab.reshape(BT, D).reshape(B, T, D)


# ---- deterministic synthetic parameters (shapes from the module __init__) ----
def init_params(key):
    ks = jax.random.split(key, 12)
    s = 0.1
    ln1_g = 1.0 + s * jax.random.normal(ks[0], (1, D), jnp.float32)
    ln1_b = s * jax.random.normal(ks[1], (1, D), jnp.float32)
    wqkv_t = s * jax.random.normal(ks[2], (D, 3 * D), jnp.float32)   # Linear(D, 3D).weight.T
    bqkv = s * jax.random.normal(ks[3], (1, 3 * D), jnp.float32)
    fsmn_w = s * jax.random.normal(ks[4], (K, 1, D), jnp.float32)    # depthwise conv weights (tap, 1, ch)
    wout_t = s * jax.random.normal(ks[5], (D, D), jnp.float32)       # Linear(D, D).weight.T
    bout = s * jax.random.normal(ks[6], (1, D), jnp.float32)
    ln2_g = 1.0 + s * jax.random.normal(ks[7], (1, D), jnp.float32)
    ln2_b = s * jax.random.normal(ks[8], (1, D), jnp.float32)
    w1_t = s * jax.random.normal(ks[9], (D, FFN), jnp.float32)       # FFN Linear(D, FFN).weight.T
    b1 = s * jax.random.normal(ks[10], (1, FFN), jnp.float32)
    w2_t = s * jax.random.normal(ks[11], (FFN, D), jnp.float32)      # FFN Linear(FFN, D).weight.T
    b2 = jnp.zeros((1, D), jnp.float32)
    return (ln1_g, ln1_b, wqkv_t, bqkv, fsmn_w, wout_t, bout,
            ln2_g, ln2_b, w1_t, b1, w2_t, b2)


def prepare_kernel_params(params):
    """One-time parameter transform for the kernel layout (not a per-call op):
    fold 1/sqrt(DK) into q, split QKV / out-proj weights per head, flatten FSMN."""
    (ln1_g, ln1_b, wqkv_t, bqkv, fsmn_w, wout_t, bout,
     ln2_g, ln2_b, w1_t, b1, w2_t, b2) = params
    scale = 1.0 / math.sqrt(DK)
    wq = wqkv_t[:, 0 * D:1 * D] * scale
    bq = bqkv[:, 0 * D:1 * D] * scale
    wk = wqkv_t[:, 1 * D:2 * D]
    bk = bqkv[:, 1 * D:2 * D]
    wv = wqkv_t[:, 2 * D:3 * D]
    bv = bqkv[:, 2 * D:3 * D]

    def split_w(w):   # (D, D) -> (H, D, DK)
        return w.reshape(D, H, DK).transpose(1, 0, 2)

    def split_b(b):   # (1, D) -> (H, 1, DK)
        return b.reshape(1, H, DK).transpose(1, 0, 2)

    wq3, wk3, wv3 = split_w(wq), split_w(wk), split_w(wv)
    bq3, bk3, bv3 = split_b(bq), split_b(bk), split_b(bv)
    wout3 = wout_t.reshape(H, DK, D)          # rows grouped per head
    fsmn_w2 = fsmn_w[:, 0, :]                 # (K, D)
    return (ln1_g, ln1_b, wq3, bq3, wk3, bk3, wv3, bv3, fsmn_w2,
            wout3, bout, ln2_g, ln2_b, w1_t, b1, w2_t, b2)


# ---- pure-JAX reference for correctness check (uses raw params) ----
def reference(x, mask, params):
    (ln1_g, ln1_b, wqkv_t, bqkv, fsmn_w, wout_t, bout,
     ln2_g, ln2_b, w1_t, b1, w2_t, b2) = params

    def ln(z, g, b):
        m = z.mean(-1, keepdims=True)
        v = ((z - m) ** 2).mean(-1, keepdims=True)
        return (z - m) / jnp.sqrt(v + EPS) * g + b

    residual = x
    xn = ln(x, ln1_g, ln1_b)
    qkv = xn @ wqkv_t + bqkv
    q, k, v = jnp.split(qkv, 3, axis=-1)

    # FSMN memory block
    mask_col = jnp.transpose(mask, (0, 2, 1))            # (B, T, 1)
    vm = v * mask_col
    vp = jnp.pad(vm, ((0, 0), (LEFT, RIGHT), (0, 0)))
    w_kd = fsmn_w[:, 0, :]                               # (K, D)
    conv = jnp.zeros_like(vm)
    for kk in range(K):
        conv = conv + vp[:, kk:kk + T, :] * w_kd[kk][None, None, :]
    fsmn = (conv + vm) * mask_col

    # multi-head attention
    qh = q.reshape(B, T, H, DK).transpose(0, 2, 1, 3) * (DK ** -0.5)
    kh = k.reshape(B, T, H, DK).transpose(0, 2, 1, 3)
    vh = v.reshape(B, T, H, DK).transpose(0, 2, 1, 3)
    scores = jnp.einsum('bhqd,bhkd->bhqk', qh, kh)
    maskb = mask[:, None, :, :] > 0                      # (B,1,1,T)
    scores = jnp.where(maskb, scores, float(np.finfo(np.float32).min))
    attn = jax.nn.softmax(scores, axis=-1)
    attn = jnp.where(maskb, attn, 0.0)
    att = jnp.einsum('bhqk,bhkd->bhqd', attn, vh).transpose(0, 2, 1, 3).reshape(B, T, D)
    att_out = att @ wout_t + bout

    x1 = residual + att_out + fsmn
    xn2 = ln(x1, ln2_g, ln2_b)
    ff = jnp.maximum(xn2 @ w1_t + b1, 0.0) @ w2_t + b2
    return x1 + ff


if __name__ == "__main__":
    key = jax.random.PRNGKey(0)
    kx, kp = jax.random.split(key)
    x = jax.random.normal(kx, (B, T, D), jnp.float32)
    mask = jnp.ones((B, 1, T), jnp.float32)
    mask = mask.at[1, 0, T - 2:].set(0.0)     # pad last 2 frames of batch element 1

    raw_params = init_params(kp)
    kernel_params = prepare_kernel_params(raw_params)   # one-time transform

    out = encoder_layer_sanm(x, mask, kernel_params)
    out = jax.block_until_ready(out)

    ref = reference(x, mask, raw_params)
    np.testing.assert_allclose(np.asarray(out), np.asarray(ref), rtol=1e-4, atol=1e-5)

    # TODO(synk): training-only dropout / stochastic-depth branches and the
    # streaming `cache` / forward_chunk path are identity / unused at inference
    # and are intentionally not modeled in the kernel.
    print("KERNEL_OK")
</pallas_src>

<mosaic_0001>
module attributes {stable_mosaic.version = 11 : i64} {
  func.func @encoder_layer_kernel(%arg0: i32, %arg1: memref<16x32xf32, #tpu.memory_space<vmem>>, %arg2: memref<16x1xf32, #tpu.memory_space<vmem>>, %arg3: memref<8x1x8xf32, #tpu.memory_space<vmem>>, %arg4: memref<1x32xf32, #tpu.memory_space<vmem>>, %arg5: memref<1x32xf32, #tpu.memory_space<vmem>>, %arg6: memref<4x32x8xf32, #tpu.memory_space<vmem>>, %arg7: memref<4x1x8xf32, #tpu.memory_space<vmem>>, %arg8: memref<4x32x8xf32, #tpu.memory_space<vmem>>, %arg9: memref<4x1x8xf32, #tpu.memory_space<vmem>>, %arg10: memref<4x32x8xf32, #tpu.memory_space<vmem>>, %arg11: memref<4x1x8xf32, #tpu.memory_space<vmem>>, %arg12: memref<5x32xf32, #tpu.memory_space<vmem>>, %arg13: memref<4x8x32xf32, #tpu.memory_space<vmem>>, %arg14: memref<1x32xf32, #tpu.memory_space<vmem>>, %arg15: memref<1x32xf32, #tpu.memory_space<vmem>>, %arg16: memref<1x32xf32, #tpu.memory_space<vmem>>, %arg17: memref<32x64xf32, #tpu.memory_space<vmem>>, %arg18: memref<1x64xf32, #tpu.memory_space<vmem>>, %arg19: memref<64x32xf32, #tpu.memory_space<vmem>>, %arg20: memref<1x32xf32, #tpu.memory_space<vmem>>, %arg21: memref<4x128xf32, #tpu.memory_space<vmem>>) attributes {dimension_semantics = [#tpu.dimension_semantics<arbitrary>], iteration_bounds = array<i64: 1>, scalar_prefetch = 0 : i64, scratch_operands = 0 : i64, tpu.core_type = #tpu.core_type<tc>, window_params = [{pipeline_mode = #tpu.pipeline_mode<synchronous>, transform_indices = @transform_0, window_bounds = array<i64: 16, 32>}, {pipeline_mode = #tpu.pipeline_mode<synchronous>, transform_indices = @transform_1, window_bounds = array<i64: 16, 1>}, {pipeline_mode = #tpu.pipeline_mode<synchronous>, transform_indices = @transform_2, window_bounds = array<i64: 8, 1, 8>}, {pipeline_mode = #tpu.pipeline_mode<synchronous>, transform_indices = @transform_3, window_bounds = array<i64: 1, 32>}, {pipeline_mode = #tpu.pipeline_mode<synchronous>, transform_indices = @transform_4, window_bounds = array<i64: 1, 32>}, {pipeline_mode = #tpu.pipeline_mode<synchronous>, transform_indices = @transform_5, window_bounds = array<i64: 4, 32, 8>}, {pipeline_mode = #tpu.pipeline_mode<synchronous>, transform_indices = @transform_6, window_bounds = array<i64: 4, 1, 8>}, {pipeline_mode = #tpu.pipeline_mode<synchronous>, transform_indices = @transform_7, window_bounds = array<i64: 4, 32, 8>}, {pipeline_mode = #tpu.pipeline_mode<synchronous>, transform_indices = @transform_8, window_bounds = array<i64: 4, 1, 8>}, {pipeline_mode = #tpu.pipeline_mode<synchronous>, transform_indices = @transform_9, window_bounds = array<i64: 4, 32, 8>}, {pipeline_mode = #tpu.pipeline_mode<synchronous>, transform_indices = @transform_10, window_bounds = array<i64: 4, 1, 8>}, {pipeline_mode = #tpu.pipeline_mode<synchronous>, transform_indices = @transform_11, window_bounds = array<i64: 5, 32>}, {pipeline_mode = #tpu.pipeline_mode<synchronous>, transform_indices = @transform_12, window_bounds = array<i64: 4, 8, 32>}, {pipeline_mode = #tpu.pipeline_mode<synchronous>, transform_indices = @transform_13, window_bounds = array<i64: 1, 32>}, {pipeline_mode = #tpu.pipeline_mode<synchronous>, transform_indices = @transform_14, window_bounds = array<i64: 1, 32>}, {pipeline_mode = #tpu.pipeline_mode<synchronous>, transform_indices = @transform_15, window_bounds = array<i64: 1, 32>}, {pipeline_mode = #tpu.pipeline_mode<synchronous>, transform_indices = @transform_16, window_bounds = array<i64: 32, 64>}, {pipeline_mode = #tpu.pipeline_mode<synchronous>, transform_indices = @transform_17, window_bounds = array<i64: 1, 64>}, {pipeline_mode = #tpu.pipeline_mode<synchronous>, transform_indices = @transform_18, window_bounds = array<i64: 64, 32>}, {pipeline_mode = #tpu.pipeline_mode<synchronous>, transform_indices = @transform_19, window_bounds = array<i64: 1, 32>}, {pipeline_mode = #tpu.pipeline_mode<synchronous>, transform_indices = @transform_20, window_bounds = array<i64: 4, 128>}]} {
    %c0 = arith.constant 0 : index
    %c0_0 = arith.constant 0 : index
    %0 = vector.load %arg1[%c0, %c0_0] : memref<16x32xf32, #tpu.memory_space<vmem>>, vector<16x32xf32>
    %c0_1 = arith.constant 0 : index
    %c0_2 = arith.constant 0 : index
    %1 = vector.load %arg2[%c0_1, %c0_2] : memref<16x1xf32, #tpu.memory_space<vmem>>, vector<16x1xf32>
    %c0_3 = arith.constant 0 : index
    %c0_4 = arith.constant 0 : index
    %c0_5 = arith.constant 0 : index
    %2 = vector.load %arg3[%c0_3, %c0_4, %c0_5] : memref<8x1x8xf32, #tpu.memory_space<vmem>>, vector<8x1x8xf32>
    %c0_6 = arith.constant 0 : index
    %c0_7 = arith.constant 0 : index
    %3 = vector.load %arg4[%c0_6, %c0_7] : memref<1x32xf32, #tpu.memory_space<vmem>>, vector<1x32xf32>
    %c0_8 = arith.constant 0 : index
    %c0_9 = arith.constant 0 : index
    %4 = vector.load %arg5[%c0_8, %c0_9] : memref<1x32xf32, #tpu.memory_space<vmem>>, vector<1x32xf32>
    %cst = arith.constant dense<0.000000e+00> : vector<16xf32>
    %5 = vector.multi_reduction <add>, %0, %cst [1] : vector<16x32xf32> to vector<16xf32>
    %6 = vector.shape_cast %5 : vector<16xf32> to vector<16x1xf32>
    %cst_10 = arith.constant 3.200000e+01 : f32
    %7 = vector.broadcast %cst_10 : f32 to vector<16x1xf32>
    %8 = arith.divf %6, %7 : vector<16x1xf32>
    %9 = vector.broadcast %8 : vector<16x1xf32> to vector<16x32xf32>
    %10 = arith.subf %0, %9 : vector<16x32xf32>
    %11 = arith.mulf %10, %10 : vector<16x32xf32>
    %cst_11 = arith.constant dense<0.000000e+00> : vector<16xf32>
    %12 = vector.multi_reduction <add>, %11, %cst_11 [1] : vector<16x32xf32> to vector<16xf32>
    %13 = vector.shape_cast %12 : vector<16xf32> to vector<16x1xf32>
    %cst_12 = arith.constant 3.200000e+01 : f32
    %14 = vector.broadcast %cst_12 : f32 to vector<16x1xf32>
    %15 = arith.divf %13, %14 : vector<16x1xf32>
    %16 = vector.broadcast %8 : vector<16x1xf32> to vector<16x32xf32>
    %17 = arith.subf %0, %16 : vector<16x32xf32>
    %cst_13 = arith.constant 9.99999996E-13 : f32
    %18 = vector.broadcast %cst_13 : f32 to vector<16x1xf32>
    %19 = arith.addf %15, %18 : vector<16x1xf32>
    %20 = math.rsqrt %19 : vector<16x1xf32>
    %21 = vector.broadcast %20 : vector<16x1xf32> to vector<16x32xf32>
    %22 = arith.mulf %17, %21 : vector<16x32xf32>
    %23 = vector.broadcast %3 : vector<1x32xf32> to vector<16x32xf32>
    %24 = arith.mulf %22, %23 : vector<16x32xf32>
    %25 = vector.broadcast %4 : vector<1x32xf32> to vector<16x32xf32>
    %26 = arith.addf %24, %25 : vector<16x32xf32>
    %c0_14 = arith.constant 0 : index
    %c0_15 = arith.constant 0 : index
    %c0_16 = arith.constant 0 : index
    %27 = vector.load %arg6[%c0_14, %c0_15, %c0_16] : memref<4x32x8xf32, #tpu.memory_space<vmem>>, vector<1x32x8xf32>
    %28 = vector.shape_cast %27 : vector<1x32x8xf32> to vector<32x8xf32>
    %cst_17 = arith.constant dense<0.000000e+00> : vector<16x8xf32>
    %29 = tpu.matmul %26, %28, %cst_17 {dimension_numbers = #tpu.dot_dimension_numbers<[1], [0], [0], [1], [0, 0, 1, 1], [], []>} : vector<16x32xf32>, vector<32x8xf32>, vector<16x8xf32> -> vector<16x8xf32>
    %c0_18 = arith.constant 0 : index
    %c0_19 = arith.constant 0 : index
    %c0_20 = arith.constant 0 : index
    %30 = vector.load %arg7[%c0_18, %c0_19, %c0_20] : memref<4x1x8xf32, #tpu.memory_space<vmem>>, vector<1x1x8xf32>
    %31 = vector.shape_cast %30 : vector<1x1x8xf32> to vector<1x8xf32>
    %32 = vector.broadcast %31 : vector<1x8xf32> to vector<16x8xf32>
    %33 = arith.addf %29, %32 : vector<16x8xf32>
    %c1 = arith.constant 1 : index
    %c0_21 = arith.constant 0 : index
    %c0_22 = arith.constant 0 : index
    %34 = vector.load %arg6[%c1, %c0_21, %c0_22] : memref<4x32x8xf32, #tpu.memory_space<vmem>>, vector<1x32x8xf32>
    %35 = vector.shape_cast %34 : vector<1x32x8xf32> to vector<32x8xf32>
    %cst_23 = arith.constant dense<0.000000e+00> : vector<16x8xf32>
    %36 = tpu.matmul %26, %35, %cst_23 {dimension_numbers = #tpu.dot_dimension_numbers<[1], [0], [0], [1], [0, 0, 1, 1], [], []>} : vector<16x32xf32>, vector<32x8xf32>, vector<16x8xf32> -> vector<16x8xf32>
    %c1_24 = arith.constant 1 : index
    %c0_25 = arith.constant 0 : index
    %c0_26 = arith.constant 0 : index
    %37 = vector.load %arg7[%c1_24, %c0_25, %c0_26] : memref<4x1x8xf32, #tpu.memory_space<vmem>>, vector<1x1x8xf32>
    %38 = vector.shape_cast %37 : vector<1x1x8xf32> to vector<1x8xf32>
    %39 = vector.broadcast %38 : vector<1x8xf32> to vector<16x8xf32>
    %40 = arith.addf %36, %39 : vector<16x8xf32>
    %c2 = arith.constant 2 : index
    %c0_27 = arith.constant 0 : index
    %c0_28 = arith.constant 0 : index
    %41 = vector.load %arg6[%c2, %c0_27, %c0_28] : memref<4x32x8xf32, #tpu.memory_space<vmem>>, vector<1x32x8xf32>
    %42 = vector.shape_cast %41 : vector<1x32x8xf32> to vector<32x8xf32>
    %cst_29 = arith.constant dense<0.000000e+00> : vector<16x8xf32>
    %43 = tpu.matmul %26, %42, %cst_29 {dimension_numbers = #tpu.dot_dimension_numbers<[1], [0], [0], [1], [0, 0, 1, 1], [], []>} : vector<16x32xf32>, vector<32x8xf32>, vector<16x8xf32> -> vector<16x8xf32>
    %c2_30 = arith.constant 2 : index
    %c0_31 = arith.constant 0 : index
    %c0_32 = arith.constant 0 : index
    %44 = vector.load %arg7[%c2_30, %c0_31, %c0_32] : memref<4x1x8xf32, #tpu.memory_space<vmem>>, vector<1x1x8xf32>
    %45 = vector.shape_cast %44 : vector<1x1x8xf32> to vector<1x8xf32>
    %46 = vector.broadcast %45 : vector<1x8xf32> to vector<16x8xf32>
    %47 = arith.addf %43, %46 : vector<16x8xf32>
    %c3 = arith.constant 3 : index
    %c0_33 = arith.constant 0 : index
    %c0_34 = arith.constant 0 : index
    %48 = vector.load %arg6[%c3, %c0_33, %c0_34] : memref<4x32x8xf32, #tpu.memory_space<vmem>>, vector<1x32x8xf32>
    %49 = vector.shape_cast %48 : vector<1x32x8xf32> to vector<32x8xf32>
    %cst_35 = arith.constant dense<0.000000e+00> : vector<16x8xf32>
    %50 = tpu.matmul %26, %49, %cst_35 {dimension_numbers = #tpu.dot_dimension_numbers<[1], [0], [0], [1], [0, 0, 1, 1], [], []>} : vector<16x32xf32>, vector<32x8xf32>, vector<16x8xf32> -> vector<16x8xf32>
    %c3_36 = arith.constant 3 : index
    %c0_37 = arith.constant 0 : index
    %c0_38 = arith.constant 0 : index
    %51 = vector.load %arg7[%c3_36, %c0_37, %c0_38] : memref<4x1x8xf32, #tpu.memory_space<vmem>>, vector<1x1x8xf32>
    %52 = vector.shape_cast %51 : vector<1x1x8xf32> to vector<1x8xf32>
    %53 = vector.broadcast %52 : vector<1x8xf32> to vector<16x8xf32>
    %54 = arith.addf %50, %53 : vector<16x8xf32>
    %c0_39 = arith.constant 0 : index
    %c0_40 = arith.constant 0 : index
    %c0_41 = arith.constant 0 : index
    %55 = vector.load %arg8[%c0_39, %c0_40, %c0_41] : memref<4x32x8xf32, #tpu.memory_space<vmem>>, vector<1x32x8xf32>
    %56 = vector.shape_cast %55 : vector<1x32x8xf32> to vector<32x8xf32>
    %cst_42 = arith.constant dense<0.000000e+00> : vector<16x8xf32>
    %57 = tpu.matmul %26, %56, %cst_42 {dimension_numbers = #tpu.dot_dimension_numbers<[1], [0], [0], [1], [0, 0, 1, 1], [], []>} : vector<16x32xf32>, vector<32x8xf32>, vector<16x8xf32> -> vector<16x8xf32>
    %c0_43 = arith.constant 0 : index
    %c0_44 = arith.constant 0 : index
    %c0_45 = arith.constant 0 : index
    %58 = vector.load %arg9[%c0_43, %c0_44, %c0_45] : memref<4x1x8xf32, #tpu.memory_space<vmem>>, vector<1x1x8xf32>
    %59 = vector.shape_cast %58 : vector<1x1x8xf32> to vector<1x8xf32>
    %60 = vector.broadcast %59 : vector<1x8xf32> to vector<16x8xf32>
    %61 = arith.addf %57, %60 : vector<16x8xf32>
    %c1_46 = arith.constant 1 : index
    %c0_47 = arith.constant 0 : index
    %c0_48 = arith.constant 0 : index
    %62 = vector.load %arg8[%c1_46, %c0_47, %c0_48] : memref<4x32x8xf32, #tpu.memory_space<vmem>>, vector<1x32x8xf32>
    %63 = vector.shape_cast %62 : vector<1x32x8xf32> to vector<32x8xf32>
    %cst_49 = arith.constant dense<0.000000e+00> : vector<16x8xf32>
    %64 = tpu.matmul %26, %63, %cst_49 {dimension_numbers = #tpu.dot_dimension_numbers<[1], [0], [0], [1], [0, 0, 1, 1], [], []>} : vector<16x32xf32>, vector<32x8xf32>, vector<16x8xf32> -> vector<16x8xf32>
    %c1_50 = arith.constant 1 : index
    %c0_51 = arith.constant 0 : index
    %c0_52 = arith.constant 0 : index
    %65 = vector.load %arg9[%c1_50, %c0_51, %c0_52] : memref<4x1x8xf32, #tpu.memory_space<vmem>>, vector<1x1x8xf32>
    %66 = vector.shape_cast %65 : vector<1x1x8xf32> to vector<1x8xf32>
    %67 = vector.broadcast %66 : vector<1x8xf32> to vector<16x8xf32>
    %68 = arith.addf %64, %67 : vector<16x8xf32>
    %c2_53 = arith.constant 2 : index
    %c0_54 = arith.constant 0 : index
    %c0_55 = arith.constant 0 : index
    %69 = vector.load %arg8[%c2_53, %c0_54, %c0_55] : memref<4x32x8xf32, #tpu.memory_space<vmem>>, vector<1x32x8xf32>
    %70 = vector.shape_cast %69 : vector<1x32x8xf32> to vector<32x8xf32>
    %cst_56 = arith.constant dense<0.000000e+00> : vector<16x8xf32>
    %71 = tpu.matmul %26, %70, %cst_56 {dimension_numbers = #tpu.dot_dimension_numbers<[1], [0], [0], [1], [0, 0, 1, 1], [], []>} : vector<16x32xf32>, vector<32x8xf32>, vector<16x8xf32> -> vector<16x8xf32>
    %c2_57 = arith.constant 2 : index
    %c0_58 = arith.constant 0 : index
    %c0_59 = arith.constant 0 : index
    %72 = vector.load %arg9[%c2_57, %c0_58, %c0_59] : memref<4x1x8xf32, #tpu.memory_space<vmem>>, vector<1x1x8xf32>
    %73 = vector.shape_cast %72 : vector<1x1x8xf32> to vector<1x8xf32>
    %74 = vector.broadcast %73 : vector<1x8xf32> to vector<16x8xf32>
    %75 = arith.addf %71, %74 : vector<16x8xf32>
    %c3_60 = arith.constant 3 : index
    %c0_61 = arith.constant 0 : index
    %c0_62 = arith.constant 0 : index
    %76 = vector.load %arg8[%c3_60, %c0_61, %c0_62] : memref<4x32x8xf32, #tpu.memory_space<vmem>>, vector<1x32x8xf32>
    %77 = vector.shape_cast %76 : vector<1x32x8xf32> to vector<32x8xf32>
    %cst_63 = arith.constant dense<0.000000e+00> : vector<16x8xf32>
    %78 = tpu.matmul %26, %77, %cst_63 {dimension_numbers = #tpu.dot_dimension_numbers<[1], [0], [0], [1], [0, 0, 1, 1], [], []>} : vector<16x32xf32>, vector<32x8xf32>, vector<16x8xf32> -> vector<16x8xf32>
    %c3_64 = arith.constant 3 : index
    %c0_65 = arith.constant 0 : index
    %c0_66 = arith.constant 0 : index
    %79 = vector.load %arg9[%c3_64, %c0_65, %c0_66] : memref<4x1x8xf32, #tpu.memory_space<vmem>>, vector<1x1x8xf32>
    %80 = vector.shape_cast %79 : vector<1x1x8xf32> to vector<1x8xf32>
    %81 = vector.broadcast %80 : vector<1x8xf32> to vector<16x8xf32>
    %82 = arith.addf %78, %81 : vector<16x8xf32>
    %c0_67 = arith.constant 0 : index
    %c0_68 = arith.constant 0 : index
    %c0_69 = arith.constant 0 : index
    %83 = vector.load %arg10[%c0_67, %c0_68, %c0_69] : memref<4x32x8xf32, #tpu.memory_space<vmem>>, vector<1x32x8xf32>
    %84 = vector.shape_cast %83 : vector<1x32x8xf32> to vector<32x8xf32>
    %cst_70 = arith.constant dense<0.000000e+00> : vector<16x8xf32>
    %85 = tpu.matmul %26, %84, %cst_70 {dimension_numbers = #tpu.dot_dimension_numbers<[1], [0], [0], [1], [0, 0, 1, 1], [], []>} : vector<16x32xf32>, vector<32x8xf32>, vector<16x8xf32> -> vector<16x8xf32>
    %c0_71 = arith.constant 0 : index
    %c0_72 = arith.constant 0 : index
    %c0_73 = arith.constant 0 : index
    %86 = vector.load %arg11[%c0_71, %c0_72, %c0_73] : memref<4x1x8xf32, #tpu.memory_space<vmem>>, vector<1x1x8xf32>
    %87 = vector.shape_cast %86 : vector<1x1x8xf32> to vector<1x8xf32>
    %88 = vector.broadcast %87 : vector<1x8xf32> to vector<16x8xf32>
    %89 = arith.addf %85, %88 : vector<16x8xf32>
    %c1_74 = arith.constant 1 : index
    %c0_75 = arith.constant 0 : index
    %c0_76 = arith.constant 0 : index
    %90 = vector.load %arg10[%c1_74, %c0_75, %c0_76] : memref<4x32x8xf32, #tpu.memory_space<vmem>>, vector<1x32x8xf32>
    %91 = vector.shape_cast %90 : vector<1x32x8xf32> to vector<32x8xf32>
    %cst_77 = arith.constant dense<0.000000e+00> : vector<16x8xf32>
    %92 = tpu.matmul %26, %91, %cst_77 {dimension_numbers = #tpu.dot_dimension_numbers<[1], [0], [0], [1], [0, 0, 1, 1], [], []>} : vector<16x32xf32>, vector<32x8xf32>, vector<16x8xf32> -> vector<16x8xf32>
    %c1_78 = arith.constant 1 : index
    %c0_79 = arith.constant 0 : index
    %c0_80 = arith.constant 0 : index
    %93 = vector.load %arg11[%c1_78, %c0_79, %c0_80] : memref<4x1x8xf32, #tpu.memory_space<vmem>>, vector<1x1x8xf32>
    %94 = vector.shape_cast %93 : vector<1x1x8xf32> to vector<1x8xf32>
    %95 = vector.broadcast %94 : vector<1x8xf32> to vector<16x8xf32>
    %96 = arith.addf %92, %95 : vector<16x8xf32>
    %c2_81 = arith.constant 2 : index
    %c0_82 = arith.constant 0 : index
    %c0_83 = arith.constant 0 : index
    %97 = vector.load %arg10[%c2_81, %c0_82, %c0_83] : memref<4x32x8xf32, #tpu.memory_space<vmem>>, vector<1x32x8xf32>
    %98 = vector.shape_cast %97 : vector<1x32x8xf32> to vector<32x8xf32>
    %cst_84 = arith.constant dense<0.000000e+00> : vector<16x8xf32>
    %99 = tpu.matmul %26, %98, %cst_84 {dimension_numbers = #tpu.dot_dimension_numbers<[1], [0], [0], [1], [0, 0, 1, 1], [], []>} : vector<16x32xf32>, vector<32x8xf32>, vector<16x8xf32> -> vector<16x8xf32>
    %c2_85 = arith.constant 2 : index
    %c0_86 = arith.constant 0 : index
    %c0_87 = arith.constant 0 : index
    %100 = vector.load %arg11[%c2_85, %c0_86, %c0_87] : memref<4x1x8xf32, #tpu.memory_space<vmem>>, vector<1x1x8xf32>
    %101 = vector.shape_cast %100 : vector<1x1x8xf32> to vector<1x8xf32>
    %102 = vector.broadcast %101 : vector<1x8xf32> to vector<16x8xf32>
    %103 = arith.addf %99, %102 : vector<16x8xf32>
    %c3_88 = arith.constant 3 : index
    %c0_89 = arith.constant 0 : index
    %c0_90 = arith.constant 0 : index
    %104 = vector.load %arg10[%c3_88, %c0_89, %c0_90] : memref<4x32x8xf32, #tpu.memory_space<vmem>>, vector<1x32x8xf32>
    %105 = vector.shape_cast %104 : vector<1x32x8xf32> to vector<32x8xf32>
    %cst_91 = arith.constant dense<0.000000e+00> : vector<16x8xf32>
    %106 = tpu.matmul %26, %105, %cst_91 {dimension_numbers = #tpu.dot_dimension_numbers<[1], [0], [0], [1], [0, 0, 1, 1], [], []>} : vector<16x32xf32>, vector<32x8xf32>, vector<16x8xf32> -> vector<16x8xf32>
    %c3_92 = arith.constant 3 : index
    %c0_93 = arith.constant 0 : index
    %c0_94 = arith.constant 0 : index
    %107 = vector.load %arg11[%c3_92, %c0_93, %c0_94] : memref<4x1x8xf32, #tpu.memory_space<vmem>>, vector<1x1x8xf32>
    %108 = vector.shape_cast %107 : vector<1x1x8xf32> to vector<1x8xf32>
    %109 = vector.broadcast %108 : vector<1x8xf32> to vector<16x8xf32>
    %110 = arith.addf %106, %109 : vector<16x8xf32>
    %111 = tpu.concatenate %89, %96, %103, %110 in 1 : vector<16x8xf32>, vector<16x8xf32>, vector<16x8xf32>, vector<16x8xf32> -> vector<16x32xf32>
    %112 = vector.broadcast %1 : vector<16x1xf32> to vector<16x32xf32>
    %113 = arith.mulf %111, %112 : vector<16x32xf32>
    %cst_95 = arith.constant 0.000000e+00 : f32
    %114 = vector.broadcast %cst_95 : f32 to vector<2x32xf32>
    %cst_96 = arith.constant 0.000000e+00 : f32
    %115 = vector.broadcast %cst_96 : f32 to vector<2x32xf32>
    %116 = tpu.concatenate %114, %113, %115 in 0 : vector<2x32xf32>, vector<16x32xf32>, vector<2x32xf32> -> vector<20x32xf32>
    %117 = tpu.iota {dimensions = array<i32: 0>} : vector<16x1xi32>
    %c8_i32 = arith.constant 8 : i32
    %c0_i32 = arith.constant 0 : i32
    %118 = arith.cmpi eq, %c8_i32, %c0_i32 : i32
    %c1_i32 = arith.constant 1 : i32
    %119 = arith.select %118, %c1_i32, %c8_i32 : i32
    %120 = vector.broadcast %119 : i32 to vector<16x1xi32>
    %121 = arith.remsi %117, %120 : vector<16x1xi32>
    %c0_i32_97 = arith.constant 0 : i32
    %122 = vector.broadcast %c0_i32_97 : i32 to vector<16x1xi32>
    %123 = arith.cmpi ne, %121, %122 : vector<16x1xi32>
    %c0_i32_98 = arith.constant 0 : i32
    %124 = vector.broadcast %c0_i32_98 : i32 to vector<16x1xi32>
    %125 = arith.cmpi slt, %121, %124 : vector<16x1xi32>
    %c0_i32_99 = arith.constant 0 : i32
    %126 = arith.cmpi slt, %119, %c0_i32_99 : i32
    %127 = vector.broadcast %126 : i1 to vector<16x1xi1>
    %128 = vector.broadcast %127 : vector<16x1xi1> to vector<16x1xi1>
    %129 = arith.xori %125, %128 : vector<16x1xi1>
    %130 = arith.andi %129, %123 : vector<16x1xi1>
    %131 = vector.broadcast %119 : i32 to vector<16x1xi32>
    %132 = arith.addi %121, %131 : vector<16x1xi32>
    %133 = arith.select %130, %132, %121 : vector<16x1xi1>, vector<16x1xi32>
    %cst_100 = arith.constant 0.000000e+00 : f32
    %134 = vector.broadcast %cst_100 : f32 to vector<16x32xf32>
    %135 = vector.extract_strided_slice %116 {offsets = [0, 0], sizes = [16, 32], strides = [1, 1]} : vector<20x32xf32> to vector<16x32xf32>
    %c2_i32 = arith.constant 2 : i32
    %136 = vector.broadcast %c2_i32 : i32 to vector<16x1xi32>
    %137 = arith.cmpi sge, %133, %136 : vector<16x1xi32>
    %138 = arith.extui %137 : vector<16x1xi1> to vector<16x1xi32>
    %139 = arith.sitofp %138 : vector<16x1xi32> to vector<16x1xf32>
    %140 = vector.broadcast %139 : vector<16x1xf32> to vector<16x32xf32>
    %141 = arith.mulf %135, %140 : vector<16x32xf32>
    %c0_101 = arith.constant 0 : index
    %c0_102 = arith.constant 0 : index
    %142 = vector.load %arg12[%c0_101, %c0_102] : memref<5x32xf32, #tpu.memory_space<vmem>>, vector<1x32xf32>
    %143 = vector.broadcast %142 : vector<1x32xf32> to vector<16x32xf32>
    %144 = arith.mulf %141, %143 : vector<16x32xf32>
    %145 = arith.addf %134, %144 : vector<16x32xf32>
    %146 = vector.extract_strided_slice %116 {offsets = [1, 0], sizes = [16, 32], strides = [1, 1]} : vector<20x32xf32> to vector<16x32xf32>
    %c1_i32_103 = arith.constant 1 : i32
    %147 = vector.broadcast %c1_i32_103 : i32 to vector<16x1xi32>
    %148 = arith.cmpi sge, %133, %147 : vector<16x1xi32>
    %149 = arith.extui %148 : vector<16x1xi1> to vector<16x1xi32>
    %150 = arith.sitofp %149 : vector<16x1xi32> to vector<16x1xf32>
    %151 = vector.broadcast %150 : vector<16x1xf32> to vector<16x32xf32>
    %152 = arith.mulf %146, %151 : vector<16x32xf32>
    %c1_104 = arith.constant 1 : index
    %c0_105 = arith.constant 0 : index
    %153 = vector.load %arg12[%c1_104, %c0_105] : memref<5x32xf32, #tpu.memory_space<vmem>>, vector<1x32xf32>
    %154 = vector.broadcast %153 : vector<1x32xf32> to vector<16x32xf32>
    %155 = arith.mulf %152, %154 : vector<16x32xf32>
    %156 = arith.addf %145, %155 : vector<16x32xf32>
    %157 = vector.extract_strided_slice %116 {offsets = [2, 0], sizes = [16, 32], strides = [1, 1]} : vector<20x32xf32> to vector<16x32xf32>
    %c2_106 = arith.constant 2 : index
    %c0_107 = arith.constant 0 : index
    %158 = vector.load %arg12[%c2_106, %c0_107] : memref<5x32xf32, #tpu.memory_space<vmem>>, vector<1x32xf32>
    %159 = vector.broadcast %158 : vector<1x32xf32> to vector<16x32xf32>
    %160 = arith.mulf %157, %159 : vector<16x32xf32>
    %161 = arith.addf %156, %160 : vector<16x32xf32>
    %162 = vector.extract_strided_slice %116 {offsets = [3, 0], sizes = [16, 32], strides = [1, 1]} : vector<20x32xf32> to vector<16x32xf32>
    %c7_i32 = arith.constant 7 : i32
    %163 = vector.broadcast %c7_i32 : i32 to vector<16x1xi32>
    %164 = arith.cmpi slt, %133, %163 : vector<16x1xi32>
    %165 = arith.extui %164 : vector<16x1xi1> to vector<16x1xi32>
    %166 = arith.sitofp %165 : vector<16x1xi32> to vector<16x1xf32>
    %167 = vector.broadcast %166 : vector<16x1xf32> to vector<16x32xf32>
    %168 = arith.mulf %162, %167 : vector<16x32xf32>
    %c3_108 = arith.constant 3 : index
    %c0_109 = arith.constant 0 : index
    %169 = vector.load %arg12[%c3_108, %c0_109] : memref<5x32xf32, #tpu.memory_space<vmem>>, vector<1x32xf32>
    %170 = vector.broadcast %169 : vector<1x32xf32> to vector<16x32xf32>
    %171 = arith.mulf %168, %170 : vector<16x32xf32>
    %172 = arith.addf %161, %171 : vector<16x32xf32>
    %173 = vector.extract_strided_slice %116 {offsets = [4, 0], sizes = [16, 32], strides = [1, 1]} : vector<20x32xf32> to vector<16x32xf32>
    %c6_i32 = arith.constant 6 : i32
    %174 = vector.broadcast %c6_i32 : i32 to vector<16x1xi32>
    %175 = arith.cmpi slt, %133, %174 : vector<16x1xi32>
    %176 = arith.extui %175 : vector<16x1xi1> to vector<16x1xi32>
    %177 = arith.sitofp %176 : vector<16x1xi32> to vector<16x1xf32>
    %178 = vector.broadcast %177 : vector<16x1xf32> to vector<16x32xf32>
    %179 = arith.mulf %173, %178 : vector<16x32xf32>
    %c4 = arith.constant 4 : index
    %c0_110 = arith.constant 0 : index
    %180 = vector.load %arg12[%c4, %c0_110] : memref<5x32xf32, #tpu.memory_space<vmem>>, vector<1x32xf32>
    %181 = vector.broadcast %180 : vector<1x32xf32> to vector<16x32xf32>
    %182 = arith.mulf %179, %181 : vector<16x32xf32>
    %183 = arith.addf %172, %182 : vector<16x32xf32>
    %184 = arith.addf %183, %113 : vector<16x32xf32>
    %185 = vector.broadcast %1 : vector<16x1xf32> to vector<16x32xf32>
    %186 = arith.mulf %184, %185 : vector<16x32xf32>
    %187 = vector.extract_strided_slice %33 {offsets = [0, 0], sizes = [8, 8], strides = [1, 1]} : vector<16x8xf32> to vector<8x8xf32>
    %188 = vector.extract_strided_slice %40 {offsets = [0, 0], sizes = [8, 8], strides = [1, 1]} : vector<16x8xf32> to vector<8x8xf32>
    %189 = vector.extract_strided_slice %47 {offsets = [0, 0], sizes = [8, 8], strides = [1, 1]} : vector<16x8xf32> to vector<8x8xf32>
    %190 = vector.extract_strided_slice %54 {offsets = [0, 0], sizes = [8, 8], strides = [1, 1]} : vector<16x8xf32> to vector<8x8xf32>
    %191 = vector.extract_strided_slice %33 {offsets = [8, 0], sizes = [8, 8], strides = [1, 1]} : vector<16x8xf32> to vector<8x8xf32>
    %192 = vector.extract_strided_slice %40 {offsets = [8, 0], sizes = [8, 8], strides = [1, 1]} : vector<16x8xf32> to vector<8x8xf32>
    %193 = vector.extract_strided_slice %47 {offsets = [8, 0], sizes = [8, 8], strides = [1, 1]} : vector<16x8xf32> to vector<8x8xf32>
    %194 = vector.extract_strided_slice %54 {offsets = [8, 0], sizes = [8, 8], strides = [1, 1]} : vector<16x8xf32> to vector<8x8xf32>
    %195 = vector.shape_cast %187 : vector<8x8xf32> to vector<1x8x8xf32>
    %196 = vector.shape_cast %188 : vector<8x8xf32> to vector<1x8x8xf32>
    %197 = vector.shape_cast %189 : vector<8x8xf32> to vector<1x8x8xf32>
    %198 = vector.shape_cast %190 : vector<8x8xf32> to vector<1x8x8xf32>
    %199 = vector.shape_cast %191 : vector<8x8xf32> to vector<1x8x8xf32>
    %200 = vector.shape_cast %192 : vector<8x8xf32> to vector<1x8x8xf32>
    %201 = vector.shape_cast %193 : vector<8x8xf32> to vector<1x8x8xf32>
    %202 = vector.shape_cast %194 : vector<8x8xf32> to vector<1x8x8xf32>
    %203 = tpu.concatenate %195, %196, %197, %198, %199, %200, %201, %202 in 0 : vector<1x8x8xf32>, vector<1x8x8xf32>, vector<1x8x8xf32>, vector<1x8x8xf32>, vector<1x8x8xf32>, vector<1x8x8xf32>, vector<1x8x8xf32>, vector<1x8x8xf32> -> vector<8x8x8xf32>
    %204 = vector.extract_strided_slice %61 {offsets = [0, 0], sizes = [8, 8], strides = [1, 1]} : vector<16x8xf32> to vector<8x8xf32>
    %205 = vector.extract_strided_slice %68 {offsets = [0, 0], sizes = [8, 8], strides = [1, 1]} : vector<16x8xf32> to vector<8x8xf32>
    %206 = vector.extract_strided_slice %75 {offsets = [0, 0], sizes = [8, 8], strides = [1, 1]} : vector<16x8xf32> to vector<8x8xf32>
    %207 = vector.extract_strided_slice %82 {offsets = [0, 0], sizes = [8, 8], strides = [1, 1]} : vector<16x8xf32> to vector<8x8xf32>
    %208 = vector.extract_strided_slice %61 {offsets = [8, 0], sizes = [8, 8], strides = [1, 1]} : vector<16x8xf32> to vector<8x8xf32>
    %209 = vector.extract_strided_slice %68 {offsets = [8, 0], sizes = [8, 8], strides = [1, 1]} : vector<16x8xf32> to vector<8x8xf32>
    %210 = vector.extract_strided_slice %75 {offsets = [8, 0], sizes = [8, 8], strides = [1, 1]} : vector<16x8xf32> to vector<8x8xf32>
    %211 = vector.extract_strided_slice %82 {offsets = [8, 0], sizes = [8, 8], strides = [1, 1]} : vector<16x8xf32> to vector<8x8xf32>
    %212 = vector.shape_cast %204 : vector<8x8xf32> to vector<1x8x8xf32>
    %213 = vector.shape_cast %205 : vector<8x8xf32> to vector<1x8x8xf32>
    %214 = vector.shape_cast %206 : vector<8x8xf32> to vector<1x8x8xf32>
    %215 = vector.shape_cast %207 : vector<8x8xf32> to vector<1x8x8xf32>
    %216 = vector.shape_cast %208 : vector<8x8xf32> to vector<1x8x8xf32>
    %217 = vector.shape_cast %209 : vector<8x8xf32> to vector<1x8x8xf32>
    %218 = vector.shape_cast %210 : vector<8x8xf32> to vector<1x8x8xf32>
    %219 = vector.shape_cast %211 : vector<8x8xf32> to vector<1x8x8xf32>
    %220 = tpu.concatenate %212, %213, %214, %215, %216, %217, %218, %219 in 0 : vector<1x8x8xf32>, vector<1x8x8xf32>, vector<1x8x8xf32>, vector<1x8x8xf32>, vector<1x8x8xf32>, vector<1x8x8xf32>, vector<1x8x8xf32>, vector<1x8x8xf32> -> vector<8x8x8xf32>
    %221 = vector.extract_strided_slice %89 {offsets = [0, 0], sizes = [8, 8], strides = [1, 1]} : vector<16x8xf32> to vector<8x8xf32>
    %222 = vector.extract_strided_slice %96 {offsets = [0, 0], sizes = [8, 8], strides = [1, 1]} : vector<16x8xf32> to vector<8x8xf32>
    %223 = vector.extract_strided_slice %103 {offsets = [0, 0], sizes = [8, 8], strides = [1, 1]} : vector<16x8xf32> to vector<8x8xf32>
    %224 = vector.extract_strided_slice %110 {offsets = [0, 0], sizes = [8, 8], strides = [1, 1]} : vector<16x8xf32> to vector<8x8xf32>
    %225 = vector.extract_strided_slice %89 {offsets = [8, 0], sizes = [8, 8], strides = [1, 1]} : vector<16x8xf32> to vector<8x8xf32>
    %226 = vector.extract_strided_slice %96 {offsets = [8, 0], sizes = [8, 8], strides = [1, 1]} : vector<16x8xf32> to vector<8x8xf32>
    %227 = vector.extract_strided_slice %103 {offsets = [8, 0], sizes = [8, 8], strides = [1, 1]} : vector<16x8xf32> to vector<8x8xf32>
    %228 = vector.extract_strided_slice %110 {offsets = [8, 0], sizes = [8, 8], strides = [1, 1]} : vector<16x8xf32> to vector<8x8xf32>
    %229 = vector.shape_cast %221 : vector<8x8xf32> to vector<1x8x8xf32>
    %230 = vector.shape_cast %222 : vector<8x8xf32> to vector<1x8x8xf32>
    %231 = vector.shape_cast %223 : vector<8x8xf32> to vector<1x8x8xf32>
    %232 = vector.shape_cast %224 : vector<8x8xf32> to vector<1x8x8xf32>
    %233 = vector.shape_cast %225 : vector<8x8xf32> to vector<1x8x8xf32>
    %234 = vector.shape_cast %226 : vector<8x8xf32> to vector<1x8x8xf32>
    %235 = vector.shape_cast %227 : vector<8x8xf32> to vector<1x8x8xf32>
    %236 = vector.shape_cast %228 : vector<8x8xf32> to vector<1x8x8xf32>
    %237 = tpu.concatenate %229, %230, %231, %232, %233, %234, %235, %236 in 0 : vector<1x8x8xf32>, vector<1x8x8xf32>, vector<1x8x8xf32>, vector<1x8x8xf32>, vector<1x8x8xf32>, vector<1x8x8xf32>, vector<1x8x8xf32>, vector<1x8x8xf32> -> vector<8x8x8xf32>
    "tpu.trace_start"() <{level = 10 : i32, message = "bqd,bkd->bqk"}> : () -> ()
    %cst_111 = arith.constant dense<0.000000e+00> : vector<8x8x8xf32>
    %238 = tpu.matmul %203, %220, %cst_111 {dimension_numbers = #tpu.dot_dimension_numbers<[2], [2], [1], [1], [0, 0, 0, 1, 1, 1], [0], [0]>} : vector<8x8x8xf32>, vector<8x8x8xf32>, vector<8x8x8xf32> -> vector<8x8x8xf32>
    %cst_112 = arith.constant 0.000000e+00 : f32
    "tpu.trace_stop"() : () -> ()
    %239 = vector.broadcast %cst_112 : f32 to vector<8x1x8xf32>
    %240 = arith.cmpf ogt, %2, %239 : vector<8x1x8xf32>
    %cst_113 = arith.constant -1.000000e+30 : f32
    %241 = vector.shape_cast %240 : vector<8x1x8xi1> to vector<8x1x8xi1>
    %242 = vector.broadcast %241 : vector<8x1x8xi1> to vector<8x8x8xi1>
    %243 = vector.broadcast %cst_113 : f32 to vector<8x8x8xf32>
    %244 = arith.select %242, %238, %243 : vector<8x8x8xi1>, vector<8x8x8xf32>
    %cst_114 = arith.constant dense<0xFF800000> : vector<8x8xf32>
    %245 = vector.multi_reduction <maximumf>, %244, %cst_114 [2] : vector<8x8x8xf32> to vector<8x8xf32>
    %246 = vector.shape_cast %245 : vector<8x8xf32> to vector<8x8x1xf32>
    %247 = vector.broadcast %246 : vector<8x8x1xf32> to vector<8x8x8xf32>
    %248 = arith.subf %244, %247 : vector<8x8x8xf32>
    %249 = math.exp %248 : vector<8x8x8xf32>
    %cst_115 = arith.constant dense<0.000000e+00> : vector<8x8xf32>
    %250 = vector.multi_reduction <add>, %249, %cst_115 [2] : vector<8x8x8xf32> to vector<8x8xf32>
    %251 = vector.shape_cast %250 : vector<8x8xf32> to vector<8x8x1xf32>
    %252 = vector.broadcast %251 : vector<8x8x1xf32> to vector<8x8x8xf32>
    %253 = arith.divf %249, %252 : vector<8x8x8xf32>
    %254 = vector.broadcast %2 : vector<8x1x8xf32> to vector<8x8x8xf32>
    %255 = arith.mulf %253, %254 : vector<8x8x8xf32>
    "tpu.trace_start"() <{level = 10 : i32, message = "bqk,bkd->bqd"}> : () -> ()
    %cst_116 = arith.constant dense<0.000000e+00> : vector<8x8x8xf32>
    %256 = tpu.matmul %255, %237, %cst_116 {dimension_numbers = #tpu.dot_dimension_numbers<[2], [1], [1], [2], [0, 0, 0, 1, 1, 2], [0], [0]>} : vector<8x8x8xf32>, vector<8x8x8xf32>, vector<8x8x8xf32> -> vector<8x8x8xf32>
    "tpu.trace_stop"() : () -> ()
    %c0_117 = arith.constant 0 : index
    %c0_118 = arith.constant 0 : index
    %257 = vector.load %arg14[%c0_117, %c0_118] : memref<1x32xf32, #tpu.memory_space<vmem>>, vector<1x32xf32>
    %258 = vector.extract_strided_slice %256 {offsets = [0, 0, 0], sizes = [1, 8, 8], strides = [1, 1, 1]} : vector<8x8x8xf32> to vector<1x8x8xf32>
    %259 = vector.shape_cast %258 : vector<1x8x8xf32> to vector<8x8xf32>
    %260 = vector.extract_strided_slice %256 {offsets = [4, 0, 0], sizes = [1, 8, 8], strides = [1, 1, 1]} : vector<8x8x8xf32> to vector<1x8x8xf32>
    %261 = vector.shape_cast %260 : vector<1x8x8xf32> to vector<8x8xf32>
    %262 = tpu.concatenate %259, %261 in 0 : vector<8x8xf32>, vector<8x8xf32> -> vector<16x8xf32>
    %c0_119 = arith.constant 0 : index
    %c0_120 = arith.constant 0 : index
    %c0_121 = arith.constant 0 : index
    %263 = vector.load %arg13[%c0_119, %c0_120, %c0_121] : memref<4x8x32xf32, #tpu.memory_space<vmem>>, vector<1x8x32xf32>
    %264 = vector.shape_cast %263 : vector<1x8x32xf32> to vector<8x32xf32>
    %cst_122 = arith.constant dense<0.000000e+00> : vector<16x32xf32>
    %265 = tpu.matmul %262, %264, %cst_122 {dimension_numbers = #tpu.dot_dimension_numbers<[1], [0], [0], [1], [0, 0, 1, 1], [], []>} : vector<16x8xf32>, vector<8x32xf32>, vector<16x32xf32> -> vector<16x32xf32>
    %266 = vector.broadcast %257 : vector<1x32xf32> to vector<16x32xf32>
    %267 = arith.addf %266, %265 : vector<16x32xf32>
    %268 = vector.extract_strided_slice %256 {offsets = [1, 0, 0], sizes = [1, 8, 8], strides = [1, 1, 1]} : vector<8x8x8xf32> to vector<1x8x8xf32>
    %269 = vector.shape_cast %268 : vector<1x8x8xf32> to vector<8x8xf32>
    %270 = vector.extract_strided_slice %256 {offsets = [5, 0, 0], sizes = [1, 8, 8], strides = [1, 1, 1]} : vector<8x8x8xf32> to vector<1x8x8xf32>
    %271 = vector.shape_cast %270 : vector<1x8x8xf32> to vector<8x8xf32>
    %272 = tpu.concatenate %269, %271 in 0 : vector<8x8xf32>, vector<8x8xf32> -> vector<16x8xf32>
    %c1_123 = arith.constant 1 : index
    %c0_124 = arith.constant 0 : index
    %c0_125 = arith.constant 0 : index
    %273 = vector.load %arg13[%c1_123, %c0_124, %c0_125] : memref<4x8x32xf32, #tpu.memory_space<vmem>>, vector<1x8x32xf32>
    %274 = vector.shape_cast %273 : vector<1x8x32xf32> to vector<8x32xf32>
    %cst_126 = arith.constant dense<0.000000e+00> : vector<16x32xf32>
    %275 = tpu.matmul %272, %274, %cst_126 {dimension_numbers = #tpu.dot_dimension_numbers<[1], [0], [0], [1], [0, 0, 1, 1], [], []>} : vector<16x8xf32>, vector<8x32xf32>, vector<16x32xf32> -> vector<16x32xf32>
    %276 = arith.addf %267, %275 : vector<16x32xf32>
    %277 = vector.extract_strided_slice %256 {offsets = [2, 0, 0], sizes = [1, 8, 8], strides = [1, 1, 1]} : vector<8x8x8xf32> to vector<1x8x8xf32>
    %278 = vector.shape_cast %277 : vector<1x8x8xf32> to vector<8x8xf32>
    %279 = vector.extract_strided_slice %256 {offsets = [6, 0, 0], sizes = [1, 8, 8], strides = [1, 1, 1]} : vector<8x8x8xf32> to vector<1x8x8xf32>
    %280 = vector.shape_cast %279 : vector<1x8x8xf32> to vector<8x8xf32>
    %281 = tpu.concatenate %278, %280 in 0 : vector<8x8xf32>, vector<8x8xf32> -> vector<16x8xf32>
    %c2_127 = arith.constant 2 : index
    %c0_128 = arith.constant 0 : index
    %c0_129 = arith.constant 0 : index
    %282 = vector.load %arg13[%c2_127, %c0_128, %c0_129] : memref<4x8x32xf32, #tpu.memory_space<vmem>>, vector<1x8x32xf32>
    %283 = vector.shape_cast %282 : vector<1x8x32xf32> to vector<8x32xf32>
    %cst_130 = arith.constant dense<0.000000e+00> : vector<16x32xf32>
    %284 = tpu.matmul %281, %283, %cst_130 {dimension_numbers = #tpu.dot_dimension_numbers<[1], [0], [0], [1], [0, 0, 1, 1], [], []>} : vector<16x8xf32>, vector<8x32xf32>, vector<16x32xf32> -> vector<16x32xf32>
    %285 = arith.addf %276, %284 : vector<16x32xf32>
    %286 = vector.extract_strided_slice %256 {offsets = [3, 0, 0], sizes = [1, 8, 8], strides = [1, 1, 1]} : vector<8x8x8xf32> to vector<1x8x8xf32>
    %287 = vector.shape_cast %286 : vector<1x8x8xf32> to vector<8x8xf32>
    %288 = vector.extract_strided_slice %256 {offsets = [7, 0, 0], sizes = [1, 8, 8], strides = [1, 1, 1]} : vector<8x8x8xf32> to vector<1x8x8xf32>
    %289 = vector.shape_cast %288 : vector<1x8x8xf32> to vector<8x8xf32>
    %290 = tpu.concatenate %287, %289 in 0 : vector<8x8xf32>, vector<8x8xf32> -> vector<16x8xf32>
    %c3_131 = arith.constant 3 : index
    %c0_132 = arith.constant 0 : index
    %c0_133 = arith.constant 0 : index
    %291 = vector.load %arg13[%c3_131, %c0_132, %c0_133] : memref<4x8x32xf32, #tpu.memory_space<vmem>>, vector<1x8x32xf32>
    %292 = vector.shape_cast %291 : vector<1x8x32xf32> to vector<8x32xf32>
    %cst_134 = arith.constant dense<0.000000e+00> : vector<16x32xf32>
    %293 = tpu.matmul %290, %292, %cst_134 {dimension_numbers = #tpu.dot_dimension_numbers<[1], [0], [0], [1], [0, 0, 1, 1], [], []>} : vector<16x8xf32>, vector<8x32xf32>, vector<16x32xf32> -> vector<16x32xf32>
    %294 = arith.addf %285, %293 : vector<16x32xf32>
    %295 = arith.addf %0, %294 : vector<16x32xf32>
    %296 = arith.addf %295, %186 : vector<16x32xf32>
    %c0_135 = arith.constant 0 : index
    %c0_136 = arith.constant 0 : index
    %297 = vector.load %arg15[%c0_135, %c0_136] : memref<1x32xf32, #tpu.memory_space<vmem>>, vector<1x32xf32>
    %c0_137 = arith.constant 0 : index
    %c0_138 = arith.constant 0 : index
    %298 = vector.load %arg16[%c0_137, %c0_138] : memref<1x32xf32, #tpu.memory_space<vmem>>, vector<1x32xf32>
    %cst_139 = arith.constant dense<0.000000e+00> : vector<16xf32>
    %299 = vector.multi_reduction <add>, %296, %cst_139 [1] : vector<16x32xf32> to vector<16xf32>
    %300 = vector.shape_cast %299 : vector<16xf32> to vector<16x1xf32>
    %cst_140 = arith.constant 3.200000e+01 : f32
    %301 = vector.broadcast %cst_140 : f32 to vector<16x1xf32>
    %302 = arith.divf %300, %301 : vector<16x1xf32>
    %303 = vector.broadcast %302 : vector<16x1xf32> to vector<16x32xf32>
    %304 = arith.subf %296, %303 : vector<16x32xf32>
    %305 = arith.mulf %304, %304 : vector<16x32xf32>
    %cst_141 = arith.constant dense<0.000000e+00> : vector<16xf32>
    %306 = vector.multi_reduction <add>, %305, %cst_141 [1] : vector<16x32xf32> to vector<16xf32>
    %307 = vector.shape_cast %306 : vector<16xf32> to vector<16x1xf32>
    %cst_142 = arith.constant 3.200000e+01 : f32
    %308 = vector.broadcast %cst_142 : f32 to vector<16x1xf32>
    %309 = arith.divf %307, %308 : vector<16x1xf32>
    %310 = vector.broadcast %302 : vector<16x1xf32> to vector<16x32xf32>
    %311 = arith.subf %296, %310 : vector<16x32xf32>
    %cst_143 = arith.constant 9.99999996E-13 : f32
    %312 = vector.broadcast %cst_143 : f32 to vector<16x1xf32>
    %313 = arith.addf %309, %312 : vector<16x1xf32>
    %314 = math.rsqrt %313 : vector<16x1xf32>
    %315 = vector.broadcast %314 : vector<16x1xf32> to vector<16x32xf32>
    %316 = arith.mulf %311, %315 : vector<16x32xf32>
    %317 = vector.broadcast %297 : vector<1x32xf32> to vector<16x32xf32>
    %318 = arith.mulf %316, %317 : vector<16x32xf32>
    %319 = vector.broadcast %298 : vector<1x32xf32> to vector<16x32xf32>
    %320 = arith.addf %318, %319 : vector<16x32xf32>
    %c0_144 = arith.constant 0 : index
    %c0_145 = arith.constant 0 : index
    %321 = vector.load %arg17[%c0_144, %c0_145] : memref<32x64xf32, #tpu.memory_space<vmem>>, vector<32x64xf32>
    %cst_146 = arith.constant dense<0.000000e+00> : vector<16x64xf32>
    %322 = tpu.matmul %320, %321, %cst_146 {dimension_numbers = #tpu.dot_dimension_numbers<[1], [0], [0], [1], [0, 0, 1, 1], [], []>} : vector<16x32xf32>, vector<32x64xf32>, vector<16x64xf32> -> vector<16x64xf32>
    %c0_147 = arith.constant 0 : index
    %c0_148 = arith.constant 0 : index
    %323 = vector.load %arg18[%c0_147, %c0_148] : memref<1x64xf32, #tpu.memory_space<vmem>>, vector<1x64xf32>
    %324 = vector.broadcast %323 : vector<1x64xf32> to vector<16x64xf32>
    %325 = arith.addf %322, %324 : vector<16x64xf32>
    %cst_149 = arith.constant 0.000000e+00 : f32
    %326 = vector.broadcast %cst_149 : f32 to vector<16x64xf32>
    %327 = arith.maximumf %325, %326 : vector<16x64xf32>
    %c0_150 = arith.constant 0 : index
    %c0_151 = arith.constant 0 : index
    %328 = vector.load %arg19[%c0_150, %c0_151] : memref<64x32xf32, #tpu.memory_space<vmem>>, vector<64x32xf32>
    %cst_152 = arith.constant dense<0.000000e+00> : vector<16x32xf32>
    %329 = tpu.matmul %327, %328, %cst_152 {dimension_numbers = #tpu.dot_dimension_numbers<[1], [0], [0], [1], [0, 0, 1, 1], [], []>} : vector<16x64xf32>, vector<64x32xf32>, vector<16x32xf32> -> vector<16x32xf32>
    %c0_153 = arith.constant 0 : index
    %c0_154 = arith.constant 0 : index
    %330 = vector.load %arg20[%c0_153, %c0_154] : memref<1x32xf32, #tpu.memory_space<vmem>>, vector<1x32xf32>
    %331 = vector.broadcast %330 : vector<1x32xf32> to vector<16x32xf32>
    %332 = arith.addf %329, %331 : vector<16x32xf32>
    %333 = arith.addf %296, %332 : vector<16x32xf32>
    %334 = vector.extract_strided_slice %333 {offsets = [0, 0], sizes = [1, 32], strides = [1, 1]} : vector<16x32xf32> to vector<1x32xf32>
    %335 = vector.extract_strided_slice %333 {offsets = [1, 0], sizes = [1, 32], strides = [1, 1]} : vector<16x32xf32> to vector<1x32xf32>
    %336 = vector.extract_strided_slice %333 {offsets = [2, 0], sizes = [1, 32], strides = [1, 1]} : vector<16x32xf32> to vector<1x32xf32>
    %337 = vector.extract_strided_slice %333 {offsets = [3, 0], sizes = [1, 32], strides = [1, 1]} : vector<16x32xf32> to vector<1x32xf32>
    %338 = tpu.concatenate %334, %335, %336, %337 in 1 : vector<1x32xf32>, vector<1x32xf32>, vector<1x32xf32>, vector<1x32xf32> -> vector<1x128xf32>
    %339 = vector.extract_strided_slice %333 {offsets = [4, 0], sizes = [1, 32], strides = [1, 1]} : vector<16x32xf32> to vector<1x32xf32>
    %340 = vector.extract_strided_slice %333 {offsets = [5, 0], sizes = [1, 32], strides = [1, 1]} : vector<16x32xf32> to vector<1x32xf32>
    %341 = vector.extract_strided_slice %333 {offsets = [6, 0], sizes = [1, 32], strides = [1, 1]} : vector<16x32xf32> to vector<1x32xf32>
    %342 = vector.extract_strided_slice %333 {offsets = [7, 0], sizes = [1, 32], strides = [1, 1]} : vector<16x32xf32> to vector<1x32xf32>
    %343 = tpu.concatenate %339, %340, %341, %342 in 1 : vector<1x32xf32>, vector<1x32xf32>, vector<1x32xf32>, vector<1x32xf32> -> vector<1x128xf32>
    %344 = vector.extract_strided_slice %333 {offsets = [8, 0], sizes = [1, 32], strides = [1, 1]} : vector<16x32xf32> to vector<1x32xf32>
    %345 = vector.extract_strided_slice %333 {offsets = [9, 0], sizes = [1, 32], strides = [1, 1]} : vector<16x32xf32> to vector<1x32xf32>
    %346 = vector.extract_strided_slice %333 {offsets = [10, 0], sizes = [1, 32], strides = [1, 1]} : vector<16x32xf32> to vector<1x32xf32>
    %347 = vector.extract_strided_slice %333 {offsets = [11, 0], sizes = [1, 32], strides = [1, 1]} : vector<16x32xf32> to vector<1x32xf32>
    %348 = tpu.concatenate %344, %345, %346, %347 in 1 : vector<1x32xf32>, vector<1x32xf32>, vector<1x32xf32>, vector<1x32xf32> -> vector<1x128xf32>
    %349 = vector.extract_strided_slice %333 {offsets = [12, 0], sizes = [1, 32], strides = [1, 1]} : vector<16x32xf32> to vector<1x32xf32>
    %350 = vector.extract_strided_slice %333 {offsets = [13, 0], sizes = [1, 32], strides = [1, 1]} : vector<16x32xf32> to vector<1x32xf32>
    %351 = vector.extract_strided_slice %333 {offsets = [14, 0], sizes = [1, 32], strides = [1, 1]} : vector<16x32xf32> to vector<1x32xf32>
    %352 = vector.extract_strided_slice %333 {offsets = [15, 0], sizes = [1, 32], strides = [1, 1]} : vector<16x32xf32> to vector<1x32xf32>
    %353 = tpu.concatenate %349, %350, %351, %352 in 1 : vector<1x32xf32>, vector<1x32xf32>, vector<1x32xf32>, vector<1x32xf32> -> vector<1x128xf32>
    %354 = tpu.concatenate %338, %343, %348, %353 in 0 : vector<1x128xf32>, vector<1x128xf32>, vector<1x128xf32>, vector<1x128xf32> -> vector<4x128xf32>
    %c0_155 = arith.constant 0 : index
    %c0_156 = arith.constant 0 : index
    %355 = vector.load %arg21[%c0_155, %c0_156] : memref<4x128xf32, #tpu.memory_space<vmem>>, vector<4x128xf32>
    tpu.vector_store %arg21[%c0_155, %c0_156], %354 {strides = array<i32>} : memref<4x128xf32, #tpu.memory_space<vmem>>, vector<4x128xf32>,
    return
  }
  func.func @transform_0(%arg0: i32) -> (i32, i32) {
    %c0_i32 = arith.constant 0 : i32
    %c0_i32_0 = arith.constant 0 : i32
    %c0_i32_1 = arith.constant 0 : i32
    return %c0_i32, %c0_i32_0 : i32, i32
  }
  func.func @transform_1(%arg0: i32) -> (i32, i32) {
    %c0_i32 = arith.constant 0 : i32
    %c0_i32_0 = arith.constant 0 : i32
    %c0_i32_1 = arith.constant 0 : i32
    return %c0_i32, %c0_i32_0 : i32, i32
  }
  func.func @transform_2(%arg0: i32) -> (i32, i32, i32) {
    %c0_i32 = arith.constant 0 : i32
    %c0_i32_0 = arith.constant 0 : i32
    %c0_i32_1 = arith.constant 0 : i32
    %c0_i32_2 = arith.constant 0 : i32
    return %c0_i32, %c0_i32_0, %c0_i32_1 : i32, i32, i32
  }
  func.func @transform_3(%arg0: i32) -> (i32, i32) {
    %c0_i32 = arith.constant 0 : i32
    %c0_i32_0 = arith.constant 0 : i32
    %c0_i32_1 = arith.constant 0 : i32
    return %c0_i32, %c0_i32_0 : i32, i32
  }
  func.func @transform_4(%arg0: i32) -> (i32, i32) {
    %c0_i32 = arith.constant 0 : i32
    %c0_i32_0 = arith.constant 0 : i32
    %c0_i32_1 = arith.constant 0 : i32
    return %c0_i32, %c0_i32_0 : i32, i32
  }
  func.func @transform_5(%arg0: i32) -> (i32, i32, i32) {
    %c0_i32 = arith.constant 0 : i32
    %c0_i32_0 = arith.constant 0 : i32
    %c0_i32_1 = arith.constant 0 : i32
    %c0_i32_2 = arith.constant 0 : i32
    return %c0_i32, %c0_i32_0, %c0_i32_1 : i32, i32, i32
  }
  func.func @transform_6(%arg0: i32) -> (i32, i32, i32) {
    %c0_i32 = arith.constant 0 : i32
    %c0_i32_0 = arith.constant 0 : i32
    %c0_i32_1 = arith.constant 0 : i32
    %c0_i32_2 = arith.constant 0 : i32
    return %c0_i32, %c0_i32_0, %c0_i32_1 : i32, i32, i32
  }
  func.func @transform_7(%arg0: i32) -> (i32, i32, i32) {
    %c0_i32 = arith.constant 0 : i32
    %c0_i32_0 = arith.constant 0 : i32
    %c0_i32_1 = arith.constant 0 : i32
    %c0_i32_2 = arith.constant 0 : i32
    return %c0_i32, %c0_i32_0, %c0_i32_1 : i32, i32, i32
  }
  func.func @transform_8(%arg0: i32) -> (i32, i32, i32) {
    %c0_i32 = arith.constant 0 : i32
    %c0_i32_0 = arith.constant 0 : i32
    %c0_i32_1 = arith.constant 0 : i32
    %c0_i32_2 = arith.constant 0 : i32
    return %c0_i32, %c0_i32_0, %c0_i32_1 : i32, i32, i32
  }
  func.func @transform_9(%arg0: i32) -> (i32, i32, i32) {
    %c0_i32 = arith.constant 0 : i32
    %c0_i32_0 = arith.constant 0 : i32
    %c0_i32_1 = arith.constant 0 : i32
    %c0_i32_2 = arith.constant 0 : i32
    return %c0_i32, %c0_i32_0, %c0_i32_1 : i32, i32, i32
  }
  func.func @transform_10(%arg0: i32) -> (i32, i32, i32) {
    %c0_i32 = arith.constant 0 : i32
    %c0_i32_0 = arith.constant 0 : i32
    %c0_i32_1 = arith.constant 0 : i32
    %c0_i32_2 = arith.constant 0 : i32
    return %c0_i32, %c0_i32_0, %c0_i32_1 : i32, i32, i32
  }
  func.func @transform_11(%arg0: i32) -> (i32, i32) {
    %c0_i32 = arith.constant 0 : i32
    %c0_i32_0 = arith.constant 0 : i32
    %c0_i32_1 = arith.constant 0 : i32
    return %c0_i32, %c0_i32_0 : i32, i32
  }
  func.func @transform_12(%arg0: i32) -> (i32, i32, i32) {
    %c0_i32 = arith.constant 0 : i32
    %c0_i32_0 = arith.constant 0 : i32
    %c0_i32_1 = arith.constant 0 : i32
    %c0_i32_2 = arith.constant 0 : i32
    return %c0_i32, %c0_i32_0, %c0_i32_1 : i32, i32, i32
  }
  func.func @transform_13(%arg0: i32) -> (i32, i32) {
    %c0_i32 = arith.constant 0 : i32
    %c0_i32_0 = arith.constant 0 : i32
    %c0_i32_1 = arith.constant 0 : i32
    return %c0_i32, %c0_i32_0 : i32, i32
  }
  func.func @transform_14(%arg0: i32) -> (i32, i32) {
    %c0_i32 = arith.constant 0 : i32
    %c0_i32_0 = arith.constant 0 : i32
    %c0_i32_1 = arith.constant 0 : i32
    return %c0_i32, %c0_i32_0 : i32, i32
  }
  func.func @transform_15(%arg0: i32) -> (i32, i32) {
    %c0_i32 = arith.constant 0 : i32
    %c0_i32_0 = arith.constant 0 : i32
    %c0_i32_1 = arith.constant 0 : i32
    return %c0_i32, %c0_i32_0 : i32, i32
  }
  func.func @transform_16(%arg0: i32) -> (i32, i32) {
    %c0_i32 = arith.constant 0 : i32
    %c0_i32_0 = arith.constant 0 : i32
    %c0_i32_1 = arith.constant 0 : i32
    return %c0_i32, %c0_i32_0 : i32, i32
  }
  func.func @transform_17(%arg0: i32) -> (i32, i32) {
    %c0_i32 = arith.constant 0 : i32
    %c0_i32_0 = arith.constant 0 : i32
    %c0_i32_1 = arith.constant 0 : i32
    return %c0_i32, %c0_i32_0 : i32, i32
  }
  func.func @transform_18(%arg0: i32) -> (i32, i32) {
    %c0_i32 = arith.constant 0 : i32
    %c0_i32_0 = arith.constant 0 : i32
    %c0_i32_1 = arith.constant 0 : i32
    return %c0_i32, %c0_i32_0 : i32, i32
  }
  func.func @transform_19(%arg0: i32) -> (i32, i32) {
    %c0_i32 = arith.constant 0 : i32
    %c0_i32_0 = arith.constant 0 : i32
    %c0_i32_1 = arith.constant 0 : i32
    return %c0_i32, %c0_i32_0 : i32, i32
  }
  func.func @transform_20(%arg0: i32) -> (i32, i32) {
    %c0_i32 = arith.constant 0 : i32
    %c0_i32_0 = arith.constant 0 : i32
    %c0_i32_1 = arith.constant 0 : i32
    return %c0_i32, %c0_i32_0 : i32, i32
  }
}

</mosaic_0001>

<bundles_post_ra>
// kernel: tpu_custom_call.1
= control target key start
LH: loop header
LB: loop body
LE: loop exit
PB: predicated region body
PF: predicated region fallthrough
CT: control target
= control target key end

     0   :  { %s5006_s0 = inlined_call_operand.vmem [shape: f32[16,32], index: 0, kind: input, shape index: {}]   ;;  %s5007_s1 = inlined_call_operand.vmem [shape: f32[16,1], index: 1, kind: input, shape index: {}]   ;;  %s5008_s2 = inlined_call_operand.vmem [shape: f32[8,1,8], index: 2, kind: input, shape index: {}]   ;;  %s5009_s3 = inlined_call_operand.vmem [shape: f32[1,32], index: 3, kind: input, shape index: {}]   ;;  %s5010_s4 = inlined_call_operand.vmem [shape: f32[1,32], index: 4, kind: input, shape index: {}]   ;;  %s5011_s5 = inlined_call_operand.vmem [shape: f32[4,32,8], index: 5, kind: input, shape index: {}]   ;;  %s5012_s6 = inlined_call_operand.vmem [shape: f32[4,1,8], index: 6, kind: input, shape index: {}]   ;;  %s5013_s7 = inlined_call_operand.vmem [shape: f32[4,32,8], index: 7, kind: input, shape index: {}]   ;;  %s5014_s8 = inlined_call_operand.vmem [shape: f32[4,1,8], index: 8, kind: input, shape index: {}]   ;;  %s5015_s9 = inlined_call_operand.vmem [shape: f32[4,32,8], index: 9, kind: input, shape index: {}]   ;;  %s5016_s10 = inlined_call_operand.vmem [shape: f32[4,1,8], index: 10, kind: input, shape index: {}]   ;;  %s5017_s11 = inlined_call_operand.vmem [shape: f32[5,32], index: 11, kind: input, shape index: {}]   ;;  %s5018_s12 = inlined_call_operand.vmem [shape: f32[4,8,32], index: 12, kind: input, shape index: {}]   ;;  %s5019_s13 = inlined_call_operand.vmem [shape: f32[1,32], index: 13, kind: input, shape index: {}]   ;;  %s5020_s14 = inlined_call_operand.vmem [shape: f32[1,32], index: 14, kind: input, shape index: {}]   ;;  %s5021_s15 = inlined_call_operand.vmem [shape: f32[1,32], index: 15, kind: input, shape index: {}]   ;;  %s5022_s16 = inlined_call_operand.vmem [shape: f32[32,64], index: 16, kind: input, shape index: {}]   ;;  %s5023_s17 = inlined_call_operand.vmem [shape: f32[1,64], index: 17, kind: input, shape index: {}]   ;;  %s5024_s18 = inlined_call_operand.vmem [shape: f32[64,32], index: 18, kind: input, shape index: {}]   ;;  %s5025_s19 = inlined_call_operand.vmem [shape: f32[1,32], index: 19, kind: input, shape index: {}]   ;;  %s5026_s20 = inlined_call_operand.hbm [shape: f32[4,128], index: 20, kind: output, shape index: {}]  }
   0x1   :  { %5030 = sst [smem:[#allocation5_spill]] %s5006_s0 }
   0x2   :  { %5031 = sst [smem:[#allocation6_spill]] %s5007_s1 }
   0x3   :  { %5032 = sst [smem:[#allocation7_spill]] %s5008_s2 }
   0x4   :  { %5033 = sst [smem:[#allocation8_spill]] %s5009_s3 }
   0x5   :  { %5034 = sst [smem:[#allocation9_spill]] %s5010_s4 }
   0x6   :  { %s5035_s23 = sld [smem:[#allocation5_spill]]  ;;  %vm80_vm0 = vcmask 261120  }
   0xc   :  { %v66_v0 = vld [vmem:[%s5035_s23] sm:$0xff]  ;;  %v67_v1 = vld [vmem:[%s5035_s23 + $0x8] sm:$0xff] }
   0xd   :  { %25 = vsyncpa [#allocation3], 0  ;;  %v81_v2 = vsel %vm80_vm0, %v66_v0, 0.0  ;;  %v84_v3 = vsel %vm80_vm0, %v67_v1, 0.0  ;;  %v124_v14 = vld [vmem:[%s5011_s5] sm:$0xff]  ;;  %v125_v15 = vld [vmem:[%s5011_s5 + $0x8] sm:$0xff] }
   0xe   :  { %82 = vadd.xlane.f32.xlu0 %v81_v2  ;;  %v3472_v16 = vld [vmem:[%s5011_s5 + $0x20] sm:$0xff]  ;;  %v4001_v17 = vpack.c.bf16 %v125_v15, %v124_v14  ;;  %v3473_v18 = vld [vmem:[%s5011_s5 + $0x28] sm:$0xff]  ;;  %v126_v20 = vld [vmem:[%s5011_s5 + $0x10] sm:$0xff]  ;;  %s5036_s24 = sld [smem:[#allocation8_spill]]  ;;  %s5037_s3 = sld [smem:[#allocation9_spill]]  ;;  %vm4208_vm1 = vmmov 0  }
   0xf   :  { %v4009_v19 = vpack.c.bf16 %v3473_v18, %v3472_v16  ;;  %v127_v21 = vld [vmem:[%s5011_s5 + $0x18] sm:$0xff]  ;;  %v3474_v22 = vld [vmem:[%s5011_s5 + $0x30] sm:$0xff]  ;;  %v3480_v26 = vld [vmem:[%s5011_s5 + $0x40] sm:$0xff]  ;;  %vm1204_vm2 = vcmask 64512   ;;  %s5038_s25 = sld [smem:[#allocation7_spill]]  ;;  %s4212_s4 = smov 24  }
  0x10   :  { %4002 = vmatprep.subr.bf16.mxu0 %v4001_v17  ;;  %v4005_v23 = vpack.c.bf16 %v127_v21, %v126_v20  ;;  %v3475_v24 = vld [vmem:[%s5011_s5 + $0x38] sm:$0xff]  ;;  %v3481_v27 = vld [vmem:[%s5011_s5 + $0x48] sm:$0xff]  ;;  %v3488_v28 = vld [vmem:[%s5011_s5 + $0x60] sm:$0xff]  ;;  %s4214_s21 = smov 64   ;;  %s4215_s1 = smov 96  }
  0x11   :  { %4010 = vmatprep.subr.bf16.mxu1 %v4009_v19  ;;  %4004 = vmatpush3.bf16.msra.mxu0 %v4001_v17  ;;  %v4013_v25 = vpack.c.bf16 %v3475_v24, %v3474_v22  ;;  %v4017_v29 = vpack.c.bf16 %v3481_v27, %v3480_v26  ;;  %v3489_v30 = vld [vmem:[%s5011_s5 + $0x68] sm:$0xff]  ;;  %v3482_v46 = vld [vmem:[%s5011_s5 + $0x50] sm:$0xff]  ;;  %v3483_v48 = vld [vmem:[%s5011_s5 + $0x58] sm:$0xff] }
  0x12   :  { %85 = vadd.xlane.f32.xlu0 %v84_v3  ;;  %4012 = vmatpush3.bf16.msra.mxu1 %v4009_v19  ;;  %v4025_v31 = vpack.c.bf16 %v3489_v30, %v3488_v28  ;;  %v3490_v49 = vld [vmem:[%s5011_s5 + $0x70] sm:$0xff]  ;;  %v3491_v50 = vld [vmem:[%s5011_s5 + $0x78] sm:$0xff]  ;;  %v480_v52 = vld [vmem:[%s5013_s7] sm:$0xff]  ;;  %v4021_v53 = vpack.c.bf16 %v3483_v48, %v3482_v46 }
  0x13   :  { %4006 = vmatprep.subr.bf16.mxu0 %v4005_v23  ;;  %4014 = vmatprep.subr.bf16.mxu1 %v4013_v25  ;;  %v4029_v54 = vpack.c.bf16 %v3491_v50, %v3490_v49  ;;  %v481_v55 = vld [vmem:[%s5013_s7 + $0x8] sm:$0xff]  ;;  %v3499_v56 = vld [vmem:[%s5013_s7 + $0x20] sm:$0xff]  ;;  %v482_v60 = vld [vmem:[%s5013_s7 + $0x10] sm:$0xff] }
  0x14   :  { %v3467_v39 = vld [vmem:[%s5036_s24] ss:$0 sm:$0xff]  ;;  %v3500_v57 = vld [vmem:[%s5013_s7 + $0x28] sm:$0xff]  ;;  %v4033_v58 = vpack.c.bf16 %v481_v55, %v480_v52  ;;  %v483_v61 = vld [vmem:[%s5013_s7 + $0x18] sm:$0xff]  ;;  %s5039_s24 = sld [smem:[#allocation6_spill]] }
  0x15   :  { %4008 = vmatpush3.bf16.msra.mxu0 %v4005_v23  ;;  %v3468_v41 = vld [vmem:[%s5037_s3] ss:$0 sm:$0xff]  ;;  %v4041_v59 = vpack.c.bf16 %v3500_v57, %v3499_v56  ;;  %v3501_v62 = vld [vmem:[%s5013_s7 + $0x30] sm:$0xff]  ;;  %v3502_v63 = vld [vmem:[%s5013_s7 + $0x38] sm:$0xff]  ;;  %s4210_s3 = smov 8  }
  0x16   :  { %4016 = vmatpush3.bf16.msra.mxu1 %v4013_v25  ;;  %4018 = vmatprep.subr.bf16.mxu0 %v4017_v29  ;;  %v3507_v2 = vld [vmem:[%s5013_s7 + $0x40] sm:$0xff]  ;;  %v3508_v3 = vld [vmem:[%s5013_s7 + $0x48] sm:$0xff]  ;;  %v832_v20 = vld [vmem:[%s5015_s9 + $0x10] sm:$0xff] }
  0x17   :  { %4026 = vmatprep.subr.bf16.mxu1 %v4025_v31  ;;  %v831_v14 = vld [vmem:[%s5015_s9 + $0x8] sm:$0xff]  ;;  %v3526_v16 = vld [vmem:[%s5015_s9 + $0x20] sm:$0xff]  ;;  %v833_v21 = vld [vmem:[%s5015_s9 + $0x18] sm:$0xff] }
  0x18   :  { %v3527_v17 = vld [vmem:[%s5015_s9 + $0x28] sm:$0xff]  ;;  %v3528_v22 = vld [vmem:[%s5015_s9 + $0x30] sm:$0xff]  ;;  %v3529_v23 = vld [vmem:[%s5015_s9 + $0x38] sm:$0xff]  ;;  %v4069_v24 = vpack.c.bf16 %v833_v21, %v832_v20 }
  0x19   :  { %v4073_v19 = vpack.c.bf16 %v3527_v17, %v3526_v16  ;;  %v3534_v25 = vld [vmem:[%s5015_s9 + $0x40] sm:$0xff]  ;;  %v3535_v26 = vld [vmem:[%s5015_s9 + $0x48] sm:$0xff]  ;;  %v4077_v27 = vpack.c.bf16 %v3529_v23, %v3528_v22 }
  0x1a   :  { %v3542_v28 = vld [vmem:[%s5015_s9 + $0x60] sm:$0xff]  ;;  %v4081_v30 = vpack.c.bf16 %v3535_v26, %v3534_v25 }
  0x1b   :  { %v3496_v48 = vld [vmem:[%s5014_s8] ss:$0 sm:$0xff]  ;;  %v3504_v55 = vld [vmem:[%s5014_s8 + $0x1] ss:$0 sm:$0xff] }
  0x1c   :  { %v3469_v52 = vld [vmem:[%s5012_s6] ss:$0 sm:$0xff]  ;;  %v3477_v57 = vld [vmem:[%s5012_s6 + $0x1] ss:$0 sm:$0xff] }
  0x9b   :  { %v83_v4 = vpop.xlane.xlu0 %82 }
  0x9c   :  { %v88_v5 = vmul.f32 0.03125, %v83_v4  ;;  %v3515_v4 = vld [vmem:[%s5013_s7 + $0x60] sm:$0xff] }
  0x9e   :  { %v90_v6 = vsub.f32 %v66_v0, %v88_v5  ;;  %v4037_v0 = vpack.c.bf16 %v483_v61, %v482_v60  ;;  %v3516_v5 = vld [vmem:[%s5013_s7 + $0x68] sm:$0xff]  ;;  %v3520_v61 = vld [vmem:[%s5014_s8 + $0x3] ss:$0 sm:$0xff] }
  0x9f   :  { %v86_v7 = vpop.xlane.xlu0 %85 }
  0xa0   :  { %v89_v8 = vmul.f32 0.03125, %v86_v7  ;;  %v92_v9 = vmul.f32 %v90_v6, %v90_v6  ;;  %v4057_v7 = vpack.c.bf16 %v3516_v5, %v3515_v4  ;;  %v3493_v4 = vld [vmem:[%s5012_s6 + $0x3] ss:$0 sm:$0xff] }
  0xa2   :  { %v91_v10 = vsub.f32 %v67_v1, %v89_v8  ;;  %v94_v11 = vsel %vm80_vm0, %v92_v9, 0.0  ;;  %v4045_v1 = vpack.c.bf16 %v3502_v63, %v3501_v62  ;;  %v3509_v8 = vld [vmem:[%s5013_s7 + $0x50] sm:$0xff]  ;;  %v3510_v9 = vld [vmem:[%s5013_s7 + $0x58] sm:$0xff] }
  0xa3   :  { %95 = vadd.xlane.f32.xlu1 %v94_v11  ;;  %v3518_v11 = vld [vmem:[%s5013_s7 + $0x78] sm:$0xff] }
  0xa4   :  { %v93_v12 = vmul.f32 %v91_v10, %v91_v10 }
  0xa6   :  { %v97_v13 = vsel %vm80_vm0, %v93_v12, 0.0  ;;  %v4053_v12 = vpack.c.bf16 %v3510_v9, %v3509_v8  ;;  %v3523_v9 = vld [vmem:[%s5016_s10] ss:$0 sm:$0xff] }
  0xa7   :  { %98 = vadd.xlane.f32.xlu1 %v97_v13  ;;  %v830_v13 = vld [vmem:[%s5015_s9] sm:$0xff] }
  0xa8   :  { %v4065_v18 = vpack.c.bf16 %v831_v14, %v830_v13 }
 0x130   :  { %v96_v32 = vpop.xlane.xlu1 %95 }
 0x131   :  { %v100_v33 = vmul.f32 0.03125, %v96_v32  ;;  %v3536_v32 = vld [vmem:[%s5015_s9 + $0x50] sm:$0xff] }
 0x133   :  { %v102_v34 = vadd.f32 1e-12, %v100_v33  ;;  %v3537_v33 = vld [vmem:[%s5015_s9 + $0x58] sm:$0xff] }
 0x134   :  { %v99_v35 = vpop.xlane.xlu1 %98 }
 0x135   :  { %4141 = vrsqrt.f32 %v102_v34  ;;  %v101_v36 = vmul.f32 0.03125, %v99_v35  ;;  %v3544_v34 = vld [vmem:[%s5015_s9 + $0x70] sm:$0xff]  ;;  %v3545_v35 = vld [vmem:[%s5015_s9 + $0x78] sm:$0xff] }
 0x137   :  { %v103_v37 = vadd.f32 1e-12, %v101_v36  ;;  %v4085_v36 = vpack.c.bf16 %v3537_v33, %v3536_v32  ;;  %v4646_v33 = vld [vmem:[%s5038_s25] sm:$0x1] }
 0x138   :  { %vm2029_vm3 = vcmp.gt.f32.partialorder %v4646_v33, 0.0 }
 0x139   :  { %4143 = vrsqrt.f32 %v103_v37  ;;  %v4093_v37 = vpack.c.bf16 %v3545_v35, %v3544_v34  ;;  %v4653_v35 = vld [vmem:[%s5038_s25 + $0x1] sm:$0x1] }
 0x13a   :  { %vm2030_vm4 = vcmp.gt.f32.partialorder %v4653_v35, 0.0 }
 0x13f   :  { %v4142_v38 = vpop.eup %4141 }
 0x140   :  { %v106_v40 = vmul.f32 %v4142_v38, %v90_v6  ;;  %v4049_v6 = vpack.c.bf16 %v3508_v3, %v3507_v2  ;;  %v4207_v38 = vmov 0.0  }
 0x142   :  { %v114_v42 = vmul.f32 %v3467_v39, %v106_v40 }
 0x143   :  { %v4144_v43 = vpop.eup %4143 }
 0x144   :  { %v4374_v44 = vadd.f32 %v3468_v41, %v114_v42  ;;  %v107_v45 = vmul.f32 %v4144_v43, %v91_v10  ;;  %v3517_v10 = vld [vmem:[%s5013_s7 + $0x70] sm:$0xff]  ;;  %s4211_s7 = smov 16  }
 0x145   :  { %v4061_v15 = vpack.c.bf16 %v3518_v11, %v3517_v10  ;;  %v3531_v11 = vld [vmem:[%s5016_s10 + $0x1] ss:$0 sm:$0xff] }
 0x146   :  { %v115_v47 = vmul.f32 %v3467_v39, %v107_v45  ;;  %3747 = vmatprep.mubr.msk.f32.mxu0 %vm80_vm0, %v4374_v44  ;;  %3758 = vmatprep.mubr.msk.f32.mxu1 %vm80_vm0, %v4374_v44  ;;  %v4209_v39 = vmov 0  }
 0x147   :  { %4140 = vset.pattern.permute.xlu1 %v4209_v39  ;;  %4139 = vset.pattern.permute.xlu0 %v4209_v39 }
 0x148   :  { %v4392_v51 = vadd.f32 %v3468_v41, %v115_v47 }
 0x14a   :  { %3748 = vmatmul.mubr.msk.f32.vlgmr.msra.gmra.mrb[0].mxu0 %vm80_vm0, %v4392_v51  ;;  %3759 = vmatmul.mubr.msk.f32.vlgmr.msra.gmra.mrb[0].mxu1 %vm80_vm0, %v4392_v51 }
 0x14b   :  { %4020 = vmatpush3.bf16.msra.mxu0 %v4017_v29  ;;  %4028 = vmatpush3.bf16.msra.mxu1 %v4025_v31  ;;  %v3543_v29 = vld [vmem:[%s5015_s9 + $0x68] sm:$0xff] }
 0x14c   :  { %3769 = vmatprep.mubr.msk.f32.mxu0 %vm80_vm0, %v4374_v44  ;;  %3780 = vmatprep.mubr.msk.f32.mxu1 %vm80_vm0, %v4374_v44  ;;  %v4089_v31 = vpack.c.bf16 %v3543_v29, %v3542_v28 }
 0x14d   :  { %4022 = vmatprep.subr.bf16.mxu0 %v4021_v53  ;;  %4030 = vmatprep.subr.bf16.mxu1 %v4029_v54 }
 0x14f   :  { %4024 = vmatpush3.bf16.msra.mxu0 %v4021_v53  ;;  %4032 = vmatpush3.bf16.msra.mxu1 %v4029_v54 }
 0x150   :  { %4034 = vmatprep.subr.bf16.mxu0 %v4033_v58  ;;  %4042 = vmatprep.subr.bf16.mxu1 %v4041_v59 }
 0x152   :  { %3770 = vmatmul.mubr.msk.f32.vlgmr.msra.gmra.mrb[2].mxu0 %vm80_vm0, %v4392_v51  ;;  %3781 = vmatmul.mubr.msk.f32.vlgmr.msra.gmra.mrb[2].mxu1 %vm80_vm0, %v4392_v51 }
 0x153   :  { %4036 = vmatpush3.bf16.msra.mxu0 %v4033_v58  ;;  %3791 = vmatprep.mubr.msk.f32.mxu0 %vm80_vm0, %v4374_v44 }
 0x154   :  { %4044 = vmatpush3.bf16.msra.mxu1 %v4041_v59  ;;  %3802 = vmatprep.mubr.msk.f32.mxu1 %vm80_vm0, %v4374_v44  ;;  %v3512_v59 = vld [vmem:[%s5014_s8 + $0x2] ss:$0 sm:$0xff] }
 0x155   :  { %4038 = vmatprep.subr.bf16.mxu0 %v4037_v0  ;;  %4046 = vmatprep.subr.bf16.mxu1 %v4045_v1 }
 0x157   :  { %4040 = vmatpush3.bf16.msra.mxu0 %v4037_v0 }
 0x158   :  { %4048 = vmatpush3.bf16.msra.mxu1 %v4045_v1  ;;  %4050 = vmatprep.subr.bf16.mxu0 %v4049_v6  ;;  %v3485_v1 = vld [vmem:[%s5012_s6 + $0x2] ss:$0 sm:$0xff] }
 0x159   :  { %4058 = vmatprep.subr.bf16.mxu1 %v4057_v7 }
 0x15a   :  { %3792 = vmatmul.mubr.msk.f32.vlgmr.msra.gmra.mrb[4].mxu0 %vm80_vm0, %v4392_v51 }
 0x15b   :  { %3803 = vmatmul.mubr.msk.f32.vlgmr.msra.gmra.mrb[4].mxu1 %vm80_vm0, %v4392_v51  ;;  %4052 = vmatpush3.bf16.msra.mxu0 %v4049_v6 }
 0x15c   :  { %3813 = vmatprep.mubr.msk.f32.mxu0 %vm80_vm0, %v4374_v44  ;;  %4060 = vmatpush3.bf16.msra.mxu1 %v4057_v7 }
 0x15d   :  { %3824 = vmatprep.mubr.msk.f32.mxu1 %vm80_vm0, %v4374_v44  ;;  %4054 = vmatprep.subr.bf16.mxu0 %v4053_v12 }
 0x15e   :  { %4062 = vmatprep.subr.bf16.mxu1 %v4061_v15 }
 0x15f   :  { %4056 = vmatpush3.bf16.msra.mxu0 %v4053_v12 }
 0x160   :  { %4064 = vmatpush3.bf16.msra.mxu1 %v4061_v15  ;;  %4066 = vmatprep.subr.bf16.mxu0 %v4065_v18 }
 0x161   :  { %4074 = vmatprep.subr.bf16.mxu1 %v4073_v19 }
 0x162   :  { %3814 = vmatmul.mubr.msk.f32.vlgmr.msra.gmra.mrb[6].mxu0 %vm80_vm0, %v4392_v51 }
 0x163   :  { %3825 = vmatmul.mubr.msk.f32.vlgmr.msra.gmra.mrb[6].mxu1 %vm80_vm0, %v4392_v51  ;;  %4068 = vmatpush3.bf16.msra.mxu0 %v4065_v18 }
 0x164   :  { %3835 = vmatprep.mubr.msk.f32.mxu0 %vm80_vm0, %v4374_v44  ;;  %4076 = vmatpush3.bf16.msra.mxu1 %v4073_v19 }
 0x165   :  { %3846 = vmatprep.mubr.msk.f32.mxu1 %vm80_vm0, %v4374_v44  ;;  %4070 = vmatprep.subr.bf16.mxu0 %v4069_v24 }
 0x166   :  { %4078 = vmatprep.subr.bf16.mxu1 %v4077_v27 }
 0x167   :  { %4072 = vmatpush3.bf16.msra.mxu0 %v4069_v24 }
 0x168   :  { %4080 = vmatpush3.bf16.msra.mxu1 %v4077_v27  ;;  %4082 = vmatprep.subr.bf16.mxu0 %v4081_v30 }
 0x169   :  { %4090 = vmatprep.subr.bf16.mxu1 %v4089_v31 }
 0x16a   :  { %3836 = vmatmul.mubr.msk.f32.vlgmr.msra.gmra.mrb[8].mxu0 %vm80_vm0, %v4392_v51 }
 0x16b   :  { %3847 = vmatmul.mubr.msk.f32.vlgmr.msra.gmra.mrb[8].mxu1 %vm80_vm0, %v4392_v51  ;;  %4084 = vmatpush3.bf16.msra.mxu0 %v4081_v30  ;;  %v1236_v30 = vlaneseq }
 0x16c   :  { %3857 = vmatprep.mubr.msk.f32.mxu0 %vm80_vm0, %v4374_v44  ;;  %4092 = vmatpush3.bf16.msra.mxu1 %v4089_v31 }
 0x16d   :  { %3868 = vmatprep.mubr.msk.f32.mxu1 %vm80_vm0, %v4374_v44  ;;  %4086 = vmatprep.subr.bf16.mxu0 %v4085_v36  ;;  %v4638_v31 = vshrl.u32 %v1236_v30, 7 }
 0x16e   :  { %4094 = vmatprep.subr.bf16.mxu1 %v4093_v37 }
 0x16f   :  { %4088 = vmatpush3.bf16.msra.mxu0 %v4085_v36  ;;  %v4641_v32 = vsub.s32 0, %v4638_v31 }
 0x170   :  { %4096 = vmatpush3.bf16.msra.mxu1 %v4093_v37  ;;  %3871 = vmatprep.subr.mxu0 %v4207_v38  ;;  %v4660_v37 = vld [vmem:[%s5038_s25 + $0x2] sm:$0x1] }
 0x171   :  { %3886 = vmatprep.subr.mxu1 %v4207_v38  ;;  %v2192_v34 = vrot.slane %v4646_v33, %v4641_v32  ;;  %v2196_v36 = vrot.slane %v4653_v35, %v4641_v32  ;;  %vm2031_vm5 = vcmp.gt.f32.partialorder %v4660_v37, 0.0 }
 0x172   :  { %3858 = vmatmul.mubr.msk.f32.vlgmr.msra.gmra.mrb[10].mxu0 %vm80_vm0, %v4392_v51 }
 0x173   :  { %3869 = vmatmul.mubr.msk.f32.vlgmr.msra.gmra.mrb[10].mxu1 %vm80_vm0, %v4392_v51  ;;  %3873 = vmatprep.mubr.msk.f32.mxu0 %vm4208_vm1, %v4207_v38 }
 0x174   :  { %3888 = vmatprep.mubr.msk.f32.mxu1 %vm4208_vm1, %v4207_v38 }
 0x21d   :  { %v3749_v40 = vpop.f32.mrb[0].mxu0  ;;  %v3760_v41 = vpop.f32.mrb[0].mxu1 }
 0x21e   :  { %v207_v42 = vpop.f32.mrb[1].mxu0  ;;  %v295_v43 = vpop.f32.mrb[1].mxu1  ;;  %v213_v13 = vadd.f32 %v3749_v40, %v3469_v52  ;;  %v301_v17 = vadd.f32 %v3760_v41, %v3477_v57  ;;  %v2200_v40 = vrot.slane %v4660_v37, %v4641_v32  ;;  %v4667_v41 = vld [vmem:[%s5038_s25 + $0x3] sm:$0x1] }
 0x21f   :  { %v208_v56 = vadd.f32 %v3469_v52, %v207_v42  ;;  %v296_v62 = vadd.f32 %v3477_v57, %v295_v43  ;;  %v2204_v42 = vrot.slane %v4667_v41, %v4641_v32  ;;  %v4674_v43 = vld [vmem:[%s5038_s25 + $0x4] sm:$0x1]  ;;  %vm2032_vm6 = vcmp.gt.f32.partialorder %v4667_v41, 0.0 }
 0x220   :  { %v2040_v57 = vsel %vm2032_vm6, 1, %v4209_v39  ;;  %vm2033_vm8 = vcmp.gt.f32.partialorder %v4674_v43, 0.0  ;;  %vm1210_vm6 = vcmask 195584  }
 0x225   :  { %v4542_v44 = vpop.f32.mrb[2].mxu0  ;;  %v4544_v45 = vpop.f32.mrb[2].mxu1 }
 0x226   :  { %v383_v46 = vpop.f32.mrb[3].mxu0  ;;  %v471_v47 = vpop.f32.mrb[3].mxu1  ;;  %v389_v22 = vadd.f32 %v4542_v44, %v3485_v1  ;;  %v477_v23 = vadd.f32 %v4544_v45, %v3493_v4  ;;  %v2208_v44 = vrot.slane %v4674_v43, %v4641_v32  ;;  %v4681_v45 = vld [vmem:[%s5038_s25 + $0x5] sm:$0x1] }
 0x227   :  { %v384_v6 = vadd.f32 %v3485_v1, %v383_v46  ;;  %v472_v7 = vadd.f32 %v3493_v4, %v471_v47  ;;  %v2212_v46 = vrot.slane %v4681_v45, %v4641_v32  ;;  %v4688_v47 = vld [vmem:[%s5038_s25 + $0x6] sm:$0x1]  ;;  %vm2034_vm10 = vcmp.gt.f32.partialorder %v4681_v45, 0.0 }
 0x228   :  { %vm2035_vm11 = vcmp.gt.f32.partialorder %v4688_v47, 0.0 }
 0x22d   :  { %v3793_v49 = vpop.f32.mrb[4].mxu0 }
 0x22e   :  { %v3804_v50 = vpop.f32.mrb[4].mxu1  ;;  %v557_v51 = vpop.f32.mrb[5].mxu0  ;;  %v563_v8 = vadd.f32 %v3793_v49, %v3496_v48  ;;  %v4695_v49 = vld [vmem:[%s5038_s25 + $0x7] sm:$0x1] }
 0x22f   :  { %v558_v53 = vadd.f32 %v3496_v48, %v557_v51  ;;  %v645_v54 = vpop.f32.mrb[5].mxu1  ;;  %v651_v10 = vadd.f32 %v3804_v50, %v3504_v55  ;;  %v2216_v48 = vrot.slane %v4688_v47, %v4641_v32  ;;  %v2220_v50 = vrot.slane %v4695_v49, %v4641_v32  ;;  %v3590_v47 = vld [vmem:[%s5018_s12 + $0x8] sm:$0xff] }
 0x230   :  { %v646_v58 = vadd.f32 %v3504_v55, %v645_v54  ;;  %v2037_v51 = vsel %vm2029_vm3, 1, %v4209_v39  ;;  %v2039_v55 = vsel %vm2031_vm5, 1, %v4209_v39  ;;  %vm2036_vm13 = vcmp.gt.f32.partialorder %v4695_v49, 0.0 }
 0x231   :  { %3872 = vmatpush3.xpose.msk.msra.mxu0 %vm1204_vm2, %v558_v53  ;;  %v2048_v52 = vrot.slane %v2037_v51, %v4641_v32  ;;  %v2038_v53 = vsel %vm2030_vm4, 1, %v4209_v39 }
 0x232   :  { %3876 = vmatprep.subr.mxu0 %v4207_v38  ;;  %v2052_v54 = vrot.slane %v2038_v53, %v4641_v32 }
 0x233   :  { %vm2077_vm7 = vcmp.eq.s32.totalorder %v2048_v52, 1 }
 0x234   :  { %3874 = vmatmul.mubr.msk.f32.vlgmr.msra.gmra.mrb[12].mxu0 %vm1204_vm2, %v208_v56  ;;  %vm2078_vm9 = vcmp.eq.s32.totalorder %v2052_v54, 1 }
 0x235   :  { %v3815_v60 = vpop.f32.mrb[6].mxu0  ;;  %3877 = vmatpush3.xpose.msk.msra.mxu0 %vm1204_vm2, %v646_v58  ;;  %3878 = vmatprep.mubr.msk.f32.mxu0 %vm4208_vm1, %v4207_v38 }
 0x236   :  { %v3826_v63 = vpop.f32.mrb[6].mxu1  ;;  %v733_v0 = vpop.f32.mrb[7].mxu0  ;;  %3881 = vmatprep.subr.mxu0 %v4207_v38  ;;  %v739_v18 = vadd.f32 %v3815_v60, %v3512_v59 }
 0x237   :  { %v734_v2 = vadd.f32 %v3512_v59, %v733_v0  ;;  %v821_v3 = vpop.f32.mrb[7].mxu1  ;;  %v827_v21 = vadd.f32 %v3826_v63, %v3520_v61  ;;  %v2041_v63 = vsel %vm2033_vm8, 1, %v4209_v39 }
 0x238   :  { %v822_v5 = vadd.f32 %v3520_v61, %v821_v3  ;;  %3879 = vmatmul.mubr.msk.f32.vlgmr.msra.gmra.mrb[14].mxu0 %vm1204_vm2, %v296_v62  ;;  %v2056_v61 = vrot.slane %v2039_v55, %v4641_v32  ;;  %v2060_v62 = vrot.slane %v2040_v57, %v4641_v32  ;;  %v2042_v3 = vsel %vm2034_vm10, 1, %v4209_v39 }
 0x239   :  { %3882 = vmatpush3.xpose.msk.msra.mxu0 %vm1204_vm2, %v734_v2  ;;  %3883 = vmatprep.mubr.msk.f32.mxu0 %vm4208_vm1, %v4207_v38 }
 0x23a   :  { %3887 = vmatpush3.xpose.msk.msra.mxu1 %vm1204_vm2, %v822_v5  ;;  %3891 = vmatprep.subr.mxu0 %v4207_v38  ;;  %vm2079_vm12 = vcmp.eq.s32.totalorder %v2056_v61, 1  ;;  %v2064_v5 = vrot.slane %v2041_v63, %v4641_v32  ;;  %vm2080_vm14 = vcmp.eq.s32.totalorder %v2060_v62, 1 }
 0x23b   :  { %3896 = vmatprep.subr.mxu1 %v4207_v38 }
 0x23c   :  { %3884 = vmatmul.mubr.msk.f32.vlgmr.msra.gmra.mrb[16].mxu0 %vm1204_vm2, %v384_v6  ;;  %v2043_v6 = vsel %vm2035_vm11, 1, %v4209_v39  ;;  %vm2081_vm15 = vcmp.eq.s32.totalorder %v2064_v5, 1 }
 0x23d   :  { %3889 = vmatmul.mubr.msk.f32.vlgmr.msra.gmra.mrb[12].mxu1 %vm1204_vm2, %v472_v7  ;;  %v3837_v12 = vpop.f32.mrb[8].mxu0  ;;  %3892 = vmatpush3.xpose.msk.msra.mxu0 %vm1204_vm2, %v563_v8  ;;  %v2068_v8 = vrot.slane %v2042_v3, %v4641_v32 }
 0x23e   :  { %v4593_v14 = vadd.f32 %v3837_v12, %v3523_v9  ;;  %v3848_v15 = vpop.f32.mrb[8].mxu1  ;;  %3897 = vmatpush3.xpose.msk.msra.mxu1 %vm1204_vm2, %v651_v10  ;;  %v907_v16 = vpop.f32.mrb[9].mxu0  ;;  %3893 = vmatprep.mubr.msk.f32.mxu0 %vm4208_vm1, %v4207_v38  ;;  %v2044_v12 = vsel %vm2036_vm13, 1, %v4209_v39 }
 0x23f   :  { %v4598_v19 = vadd.f32 %v3848_v15, %v3531_v11  ;;  %v995_v20 = vpop.f32.mrb[9].mxu1  ;;  %3898 = vmatprep.mubr.msk.f32.mxu1 %vm4208_vm1, %v4207_v38  ;;  %3901 = vmatprep.subr.mxu0 %v4207_v38  ;;  %v4612_v24 = vadd.f32 %v3523_v9, %v907_v16  ;;  %vm2082_vm3 = vcmp.eq.s32.totalorder %v2068_v8, 1 }
 0x240   :  { %3894 = vmatmul.mubr.msk.f32.vlgmr.msra.gmra.mrb[18].mxu0 %vm1204_vm2, %v213_v13  ;;  %3906 = vmatprep.subr.mxu1 %v4207_v38  ;;  %v4617_v25 = vadd.f32 %v3531_v11, %v995_v20 }
 0x241   :  { %3899 = vmatmul.mubr.msk.f32.vlgmr.msra.gmra.mrb[14].mxu1 %vm1204_vm2, %v301_v17  ;;  %3902 = vmatpush3.xpose.msk.msra.mxu0 %vm1204_vm2, %v739_v18  ;;  %v2072_v17 = vrot.slane %v2043_v6, %v4641_v32 }
 0x242   :  { %3907 = vmatpush3.xpose.msk.msra.mxu1 %vm1204_vm2, %v827_v21  ;;  %3903 = vmatprep.mubr.msk.f32.mxu0 %vm4208_vm1, %v4207_v38  ;;  %v2076_v21 = vrot.slane %v2044_v12, %v4641_v32 }
 0x243   :  { %3908 = vmatprep.mubr.msk.f32.mxu1 %vm4208_vm1, %v4207_v38  ;;  %3911 = vmatprep.subr.mxu0 %v4207_v38  ;;  %vm2083_vm4 = vcmp.eq.s32.totalorder %v2072_v17, 1 }
 0x244   :  { %3904 = vmatmul.mubr.msk.f32.vlgmr.msra.gmra.mrb[20].mxu0 %vm1204_vm2, %v389_v22  ;;  %3916 = vmatprep.subr.mxu1 %v4207_v38  ;;  %vm2084_vm5 = vcmp.eq.s32.totalorder %v2076_v21, 1 }
 0x245   :  { %3909 = vmatmul.mubr.msk.f32.vlgmr.msra.gmra.mrb[16].mxu1 %vm1204_vm2, %v477_v23  ;;  %v4622_v26 = vpop.f32.mrb[10].mxu0  ;;  %3912 = vmatpush3.msra.mxu0 %v4612_v24 }
 0x246   :  { %v4625_v27 = vpop.f32.mrb[10].mxu1  ;;  %3917 = vmatpush3.msra.mxu1 %v4617_v25  ;;  %v4628_v28 = vpop.f32.mrb[11].mxu0  ;;  %3913 = vmatprep.mubr.msk.f32.mxu0 %vm4208_vm1, %v4207_v38 }
 0x247   :  { %v4632_v29 = vpop.f32.mrb[11].mxu1  ;;  %3921 = vmatprep.subr.mxu0 %v4207_v38  ;;  %3918 = vmatprep.mubr.msk.f32.mxu1 %vm4208_vm1, %v4207_v38 }
 0x248   :  { %3926 = vmatprep.subr.mxu1 %v4207_v38 }
 0x307   :  { %v1493_v56 = vpop.f32.mrb[12].mxu0 }
 0x308   :  { %v2085_v58 = vsel %vm2077_vm7, %v1493_v56, -1e+30  ;;  %v3875_v59 = vpop.f32.mrb[13].mxu0 }
 0x309   :  { %v2093_v60 = vsel %vm1204_vm2, %v2085_v58, -inf }
 0x30a   :  { %2094 = vmax.xlane.f32.xlu0 %v2093_v60 }
 0x30b   :  { %v1569_v0 = vpop.f32.mrb[14].mxu0 }
 0x30c   :  { %v2086_v1 = vsel %vm2078_vm9, %v1569_v0, -1e+30  ;;  %v3880_v2 = vpop.f32.mrb[15].mxu0  ;;  %vm1227_vm9 = vcmask 1041408  }
 0x30d   :  { %v2096_v4 = vsel %vm1204_vm2, %v2086_v1, -inf }
 0x30e   :  { %2097 = vmax.xlane.f32.xlu0 %v2096_v4 }
 0x30f   :  { %v1645_v7 = vpop.f32.mrb[16].mxu0 }
 0x310   :  { %v2087_v9 = vsel %vm2079_vm12, %v1645_v7, -1e+30  ;;  %v1721_v10 = vpop.f32.mrb[12].mxu1  ;;  %v3885_v11 = vpop.f32.mrb[17].mxu0 }
 0x311   :  { %v2088_v13 = vsel %vm2080_vm14, %v1721_v10, -1e+30  ;;  %v3890_v15 = vpop.f32.mrb[13].mxu1  ;;  %v2099_v16 = vsel %vm1204_vm2, %v2087_v9, -inf }
 0x312   :  { %v2102_v18 = vsel %vm1204_vm2, %v2088_v13, -inf  ;;  %2100 = vmax.xlane.f32.xlu1 %v2099_v16 }
 0x313   :  { %2103 = vmax.xlane.f32.xlu0 %v2102_v18  ;;  %v1797_v20 = vpop.f32.mrb[18].mxu0 }
 0x314   :  { %v2089_v22 = vsel %vm2081_vm15, %v1797_v20, -1e+30  ;;  %v1873_v23 = vpop.f32.mrb[14].mxu1  ;;  %v3895_v30 = vpop.f32.mrb[19].mxu0 }
 0x315   :  { %v3900_v51 = vpop.f32.mrb[15].mxu1  ;;  %v2105_v39 = vsel %vm1204_vm2, %v2089_v22, -inf  ;;  %v2090_v52 = vsel %vm2082_vm3, %v1873_v23, -1e+30  ;;  %vm1348_vm3 = vcmask 1042432  }
 0x316   :  { %2106 = vmax.xlane.f32.xlu1 %v2105_v39  ;;  %v2108_v59 = vsel %vm1204_vm2, %v2090_v52, -inf }
 0x317   :  { %v1949_v53 = vpop.f32.mrb[20].mxu0 }
 0x318   :  { %v2091_v54 = vsel %vm2083_vm4, %v1949_v53, -1e+30  ;;  %v2025_v55 = vpop.f32.mrb[16].mxu1  ;;  %v3905_v56 = vpop.f32.mrb[21].mxu0  ;;  %vm1387_vm4 = vcmask 1043456  }
 0x319   :  { %v3910_v57 = vpop.f32.mrb[17].mxu1  ;;  %v2111_v60 = vsel %vm1204_vm2, %v2091_v54, -inf  ;;  %v2092_v61 = vsel %vm2084_vm5, %v2025_v55, -1e+30  ;;  %vm1309_vm5 = vcmask 1046528  }
 0x31a   :  { %2109 = vmax.xlane.f32.xlu1 %v2108_v59  ;;  %2112 = vmax.xlane.f32.xlu0 %v2111_v60  ;;  %v2114_v62 = vsel %vm1204_vm2, %v2092_v61, -inf }
 0x31e   :  { %2115 = vmax.xlane.f32.xlu1 %v2114_v62 }
 0x397   :  { %v2095_v63 = vpop.xlane.xlu0 %2094 }
 0x398   :  { %v2117_v0 = vsub.f32 %v2085_v58, %v2095_v63 }
 0x39a   :  { %v2125_v2 = vmul.f32 1.442695, %v2117_v0 }
 0x39b   :  { %v2098_v3 = vpop.xlane.xlu0 %2097 }
 0x39c   :  { %4145 = vpow2.f32 %v2125_v2  ;;  %v2118_v4 = vsub.f32 %v2086_v1, %v2098_v3  ;;  %v69_v3 = vld [vmem:[%s5039_s24 + $0x8] sm:$0xff] }
 0x39e   :  { %v2127_v5 = vmul.f32 1.442695, %v2118_v4  ;;  %v68_v4 = vld [vmem:[%s5039_s24] sm:$0xff] }
 0x39f   :  { %v2101_v6 = vpop.xlane.xlu1 %2100 }
 0x3a0   :  { %4147 = vpow2.f32 %v2127_v5  ;;  %v2104_v7 = vpop.xlane.xlu0 %2103  ;;  %v2119_v8 = vsub.f32 %v2087_v9, %v2101_v6  ;;  %v3539_v5 = vld [vmem:[%s5016_s10 + $0x2] ss:$0 sm:$0xff] }
 0x3a1   :  { %v2120_v10 = vsub.f32 %v2088_v13, %v2104_v7  ;;  %v1084_v6 = vadd.f32 %v3539_v5, %v4628_v28  ;;  %v1089_v7 = vadd.f32 %v4622_v26, %v3539_v5 }
 0x3a2   :  { %v2129_v11 = vmul.f32 1.442695, %v2119_v8  ;;  %v3547_v8 = vld [vmem:[%s5016_s10 + $0x3] ss:$0 sm:$0xff] }
 0x3a3   :  { %v2131_v12 = vmul.f32 1.442695, %v2120_v10  ;;  %v2107_v15 = vpop.xlane.xlu1 %2106  ;;  %v1172_v10 = vadd.f32 %v3547_v8, %v4632_v29 }
 0x3a4   :  { %4149 = vpow2.f32 %v2129_v11  ;;  %v2121_v16 = vsub.f32 %v2089_v22, %v2107_v15 }
 0x3a5   :  { %4151 = vpow2.f32 %v2131_v12 }
 0x3a6   :  { %v4731_v17 = vpop.eup %4145  ;;  %v2133_v18 = vmul.f32 1.442695, %v2121_v16 }
 0x3a7   :  { %v2110_v58 = vpop.xlane.xlu1 %2109  ;;  %v2113_v20 = vpop.xlane.xlu0 %2112  ;;  %v2141_v1 = vsel %vm1204_vm2, %v4731_v17, 0.0 }
 0x3a8   :  { %4153 = vpow2.f32 %v2133_v18  ;;  %v2122_v21 = vsub.f32 %v2090_v52, %v2110_v58  ;;  %v2123_v23 = vsub.f32 %v2091_v54, %v2113_v20  ;;  %2142 = vadd.xlane.f32.xlu0 %v2141_v1 }
 0x3aa   :  { %v4148_v9 = vpop.eup %4147  ;;  %v2135_v13 = vmul.f32 1.442695, %v2122_v21  ;;  %v2137_v30 = vmul.f32 1.442695, %v2123_v23 }
 0x3ab   :  { %v2116_v51 = vpop.xlane.xlu1 %2115  ;;  %v2144_v39 = vsel %vm1204_vm2, %v4148_v9, 0.0 }
 0x3ac   :  { %4155 = vpow2.f32 %v2135_v13  ;;  %v2124_v22 = vsub.f32 %v2092_v61, %v2116_v51  ;;  %2145 = vadd.xlane.f32.xlu0 %v2144_v39 }
 0x3ad   :  { %4157 = vpow2.f32 %v2137_v30 }
 0x3ae   :  { %v4736_v53 = vpop.eup %4149  ;;  %v2139_v55 = vmul.f32 1.442695, %v2124_v22 }
 0x3af   :  { %v4738_v56 = vpop.eup %4151  ;;  %v2147_v52 = vsel %vm1204_vm2, %v4736_v53, 0.0 }
 0x3b0   :  { %4159 = vpow2.f32 %v2139_v55  ;;  %2148 = vadd.xlane.f32.xlu1 %v2147_v52  ;;  %v2150_v54 = vsel %vm1204_vm2, %v4738_v56, 0.0 }
 0x3b1   :  { %2151 = vadd.xlane.f32.xlu0 %v2150_v54  ;;  %v3593_v54 = vld [vmem:[%s5018_s12 + $0x10] sm:$0xff] }
 0x3b2   :  { %v4744_v57 = vpop.eup %4153 }
 0x3b3   :  { %v2153_v59 = vsel %vm1204_vm2, %v4744_v57, 0.0 }
 0x3b4   :  { %2154 = vadd.xlane.f32.xlu1 %v2153_v59 }
 0x3b6   :  { %v4748_v60 = vpop.eup %4155 }
 0x3b7   :  { %v4750_v61 = vpop.eup %4157  ;;  %v2156_v62 = vsel %vm1204_vm2, %v4748_v60, 0.0 }
 0x3b8   :  { %2157 = vadd.xlane.f32.xlu1 %v2156_v62  ;;  %v2159_v63 = vsel %vm1204_vm2, %v4750_v61, 0.0 }
 0x3b9   :  { %2160 = vadd.xlane.f32.xlu0 %v2159_v63 }
 0x3ba   :  { %v4756_v0 = vpop.eup %4159 }
 0x3bb   :  { %v2162_v2 = vsel %vm1204_vm2, %v4756_v0, 0.0 }
 0x3bc   :  { %2163 = vadd.xlane.f32.xlu1 %v2162_v2 }
 0x3cd   :  { %1220 = vperm.xlu1 %4140, %v69_v3  }
 0x3cf   :  { %1215 = vperm.xlu0 %4139, %v68_v4  }
 0x3d1   :  { %1182 = vrot.lane.b32.xlu1 %v4617_v25, %s4210_s3  ;;  %v1177_v25 = vadd.f32 %v4625_v27, %v3547_v8 }
 0x3d5   :  { %1184 = vrot.lane.b32.xlu1 %v4598_v19, %s4210_s3 }
 0x3d9   :  { %1190 = vrot.lane.b32.xlu1 %v1084_v6, %s4211_s7 }
 0x3dd   :  { %1192 = vrot.lane.b32.xlu1 %v1089_v7, %s4211_s7 }
 0x3e1   :  { %1198 = vrot.lane.b32.xlu1 %v1172_v10, %s4212_s4 }
 0x3e5   :  { %1200 = vrot.lane.b32.xlu1 %v1177_v25, %s4212_s4 }
 0x435   :  { %v2143_v11 = vpop.xlane.xlu0 %2142 }
 0x436   :  { %4161 = vrcp.f32 %v2143_v11 }
 0x439   :  { %v2146_v12 = vpop.xlane.xlu0 %2145 }
 0x43a   :  { %4163 = vrcp.f32 %v2146_v12 }
 0x43d   :  { %v2149_v28 = vpop.xlane.xlu1 %2148 }
 0x43e   :  { %4165 = vrcp.f32 %v2149_v28  ;;  %v2152_v15 = vpop.xlane.xlu0 %2151 }
 0x43f   :  { %4167 = vrcp.f32 %v2152_v15  ;;  %v1243_v15 = vand.u32 7, %v4638_v31 }
 0x440   :  { %v4162_v26 = vpop.eup %4161 }
 0x441   :  { %v2166_v16 = vmul.f32 %v4162_v26, %v4731_v17  ;;  %v2155_v18 = vpop.xlane.xlu1 %2154  ;;  %vm1280_vm8 = vcmp.ge.s32.totalorder %v1243_v15, 1  ;;  %vm1340_vm11 = vcmp.lt.s32.totalorder %v1243_v15, 7  ;;  %vm1379_vm12 = vcmp.lt.s32.totalorder %v1243_v15, 6 }
 0x442   :  { %4169 = vrcp.f32 %v2155_v18  ;;  %vm1263_vm14 = vcmp.ge.s32.totalorder %v1243_v15, 2  ;;  %v3562_v15 = vld [vmem:[%s5017_s11 + $0x4] ss:$0 sm:$0xff] }
 0x443   :  { %v2229_v29 = vmul.f32 %v2192_v34, %v2166_v16 }
 0x444   :  { %v4164_v58 = vpop.eup %4163 }
 0x445   :  { %v2168_v27 = vmul.f32 %v4164_v58, %v4148_v9  ;;  %v2158_v20 = vpop.xlane.xlu1 %2157  ;;  %3914 = vmatmul.mubr.msk.f32.vlgmr.msra.gmra.mrb[22].mxu0 %vm1204_vm2, %v2229_v29 }
 0x446   :  { %4171 = vrcp.f32 %v2158_v20  ;;  %3922 = vmatpush3.msra.mxu0 %v1084_v6  ;;  %v2161_v1 = vpop.xlane.xlu0 %2160  ;;  %3923 = vmatprep.mubr.msk.f32.mxu0 %vm4208_vm1, %v4207_v38 }
 0x447   :  { %4173 = vrcp.f32 %v2161_v1  ;;  %v2230_v17 = vmul.f32 %v2196_v36, %v2168_v27  ;;  %3931 = vmatprep.subr.mxu0 %v4207_v38 }
 0x448   :  { %v4166_v33 = vpop.eup %4165 }
 0x449   :  { %v4168_v34 = vpop.eup %4167  ;;  %v2170_v21 = vmul.f32 %v4166_v33, %v4736_v53  ;;  %v2164_v23 = vpop.xlane.xlu1 %2163  ;;  %3919 = vmatmul.mubr.msk.f32.vlgmr.msra.gmra.mrb[18].mxu1 %vm1204_vm2, %v2230_v17 }
 0x44a   :  { %v2172_v9 = vmul.f32 %v4168_v34, %v4738_v56  ;;  %4175 = vrcp.f32 %v2164_v23  ;;  %3927 = vmatpush3.msra.mxu1 %v1172_v10  ;;  %3928 = vmatprep.mubr.msk.f32.mxu1 %vm4208_vm1, %v4207_v38  ;;  %v1238_v10 = vadd.s32 8, %v4638_v31  ;;  %v3553_v31 = vsel %vm1280_vm8, 1.0, %v4207_v38 }
 0x44b   :  { %3936 = vmatprep.subr.mxu1 %v4207_v38  ;;  %v2231_v35 = vmul.f32 %v2200_v40, %v2170_v21  ;;  %v1289_v17 = vrot.slane %v3553_v31, 7  ;;  %vm3423_vm8 = vcmask 785408  }
 0x44c   :  { %v4170_v36 = vpop.eup %4169  ;;  %v2232_v13 = vmul.f32 %v2204_v42, %v2172_v9 }
 0x44d   :  { %v2174_v30 = vmul.f32 %v4170_v36, %v4744_v57  ;;  %3924 = vmatmul.mubr.msk.f32.vlgmr.msra.gmra.mrb[24].mxu0 %vm1204_vm2, %v2231_v35  ;;  %v4855_v3 = vpop.permute.xlu1 %1220 }
 0x44e   :  { %3929 = vmatmul.mubr.msk.f32.vlgmr.msra.gmra.mrb[20].mxu1 %vm1204_vm2, %v2232_v13  ;;  %3932 = vmatpush3.msra.mxu0 %v4593_v14  ;;  %v4863_v58 = vpop.permute.xlu0 %1215 }
 0x44f   :  { %3937 = vmatpush3.msra.mxu1 %v4598_v19  ;;  %3933 = vmatprep.mubr.msk.f32.mxu0 %vm4208_vm1, %v4207_v38  ;;  %v2233_v37 = vmul.f32 %v2208_v44, %v2174_v30  ;;  %v3557_v30 = vsel %vm1340_vm11, 1.0, %v4207_v38 }
 0x450   :  { %v4172_v40 = vpop.eup %4171  ;;  %3941 = vmatprep.subr.mxu0 %v4207_v38  ;;  %3938 = vmatprep.mubr.msk.f32.mxu1 %vm4208_vm1, %v4207_v38 }
 0x451   :  { %v4174_v41 = vpop.eup %4173  ;;  %v2176_v42 = vmul.f32 %v4172_v40, %v4748_v60  ;;  %3934 = vmatmul.mubr.msk.f32.vlgmr.msra.gmra.mrb[26].mxu0 %vm1204_vm2, %v2233_v37  ;;  %3946 = vmatprep.subr.mxu1 %v4207_v38  ;;  %v1183_v4 = vpop.permute.xlu1 %1182  ;;  %v3555_v37 = vld [vmem:[%s5017_s11 + $0x1] ss:$0 sm:$0xff]  ;;  %v3560_v40 = vsel %vm1379_vm12, 1.0, %v4207_v38 }
 0x452   :  { %v2178_v19 = vmul.f32 %v4174_v41, %v4750_v61  ;;  %3942 = vmatpush3.msra.mxu0 %v1089_v7  ;;  %3943 = vmatprep.mubr.msk.f32.mxu0 %vm4208_vm1, %v4207_v38  ;;  %v1205_v26 = vsel %vm1204_vm2, %v4612_v24, %v1183_v4 }
 0x453   :  { %v2234_v43 = vmul.f32 %v2212_v46, %v2176_v42  ;;  %v2822_v46 = vld [vmem:[%s5018_s12] sm:$0xff] }
 0x454   :  { %v4176_v44 = vpop.eup %4175  ;;  %v2235_v51 = vmul.f32 %v2216_v48, %v2178_v19  ;;  %3951 = vmatprep.subr.mxu0 %v2822_v46 }
 0x455   :  { %v2180_v39 = vmul.f32 %v4176_v44, %v4756_v0  ;;  %3939 = vmatmul.mubr.msk.f32.vlgmr.msra.gmra.mrb[22].mxu1 %vm1204_vm2, %v2234_v43  ;;  %v3596_v0 = vld [vmem:[%s5018_s12 + $0x18] sm:$0xff]  ;;  %v1185_v5 = vpop.permute.xlu1 %1184 }
 0x456   :  { %3944 = vmatmul.mubr.msk.f32.vlgmr.msra.gmra.mrb[28].mxu0 %vm1204_vm2, %v2235_v51  ;;  %3947 = vmatpush3.msra.mxu1 %v1177_v25  ;;  %v1250_v25 = vand.u32 7, %v1238_v10  ;;  %v1206_v12 = vsel %vm1204_vm2, %v4593_v14, %v1185_v5  ;;  %v3550_v51 = vsel %vm1263_vm14, 1.0, %v4207_v38 }
 0x457   :  { %3948 = vmatprep.mubr.msk.f32.mxu1 %vm4208_vm1, %v4207_v38  ;;  %v2236_v45 = vmul.f32 %v2220_v50, %v2180_v39  ;;  %3952 = vmatpush3.msra.mxu0 %v2822_v46  ;;  %vm1207_vm1 = vcmask 130048   ;;  %v1349_v39 = vrot.slane %v3557_v30, 5  ;;  %v1388_v46 = vrot.slane %v3560_v40, 4 }
 0x458   :  { %3956 = vmatprep.subr.mxu0 %v3590_v47  ;;  %vm1281_vm7 = vcmp.ge.s32.totalorder %v1250_v25, 1  ;;  %vm1341_vm10 = vcmp.lt.s32.totalorder %v1250_v25, 7  ;;  %vm1380_vm13 = vcmp.lt.s32.totalorder %v1250_v25, 6  ;;  %vm1264_vm15 = vcmp.ge.s32.totalorder %v1250_v25, 2 }
 0x459   :  { %3949 = vmatmul.mubr.msk.f32.vlgmr.msra.gmra.mrb[24].mxu1 %vm1204_vm2, %v2236_v45  ;;  %v1191_v6 = vpop.permute.xlu1 %1190  ;;  %v3554_v14 = vsel %vm1281_vm7, 1.0, %v4207_v38  ;;  %v3558_v35 = vsel %vm1341_vm10, 1.0, %v4207_v38  ;;  %v3561_v19 = vsel %vm1380_vm13, 1.0, %v4207_v38  ;;  %v3551_v45 = vsel %vm1264_vm15, 1.0, %v4207_v38 }
 0x45a   :  { %v1208_v18 = vsel %vm1207_vm1, %v1205_v26, %v1191_v6  ;;  %v1290_v1 = vrot.slane %v3554_v14, 7  ;;  %v1350_v42 = vrot.slane %v3558_v35, 5  ;;  %vm3324_vm7 = vcmask 523264  }
 0x45d   :  { %v1193_v7 = vpop.permute.xlu1 %1192 }
 0x45e   :  { %v1209_v28 = vsel %vm1207_vm1, %v1206_v12, %v1193_v7  ;;  %vm1330_vm1 = vcmask 1045504  }
 0x461   :  { %v1199_v8 = vpop.permute.xlu1 %1198 }
 0x462   :  { %v1211_v29 = vsel %vm1210_vm6, %v1208_v18, %v1199_v8 }
 0x463   :  { %v4870_v20 = vmul.f32 %v4863_v58, %v1211_v29 }
 0x465   :  { %v1201_v11 = vpop.permute.xlu1 %1200  ;;  %v1228_v33 = vrot.slane %v4870_v20, 6 }
 0x466   :  { %v1212_v16 = vsel %vm1210_vm6, %v1209_v28, %v1201_v11  ;;  %vm1369_vm6 = vcmask 1044480  }
 0x467   :  { %v4866_v27 = vmul.f32 %v4855_v3, %v1212_v16  ;;  %v1234_v9 = vsel %vm1227_vm9, 0.0, %v1228_v33 }
 0x468   :  { %v1295_v41 = vmul.f32 %v1289_v17, %v1234_v9  ;;  %v1394_v18 = vmul.f32 %v1388_v46, %v1234_v9 }
 0x469   :  { %v1229_v24 = vrot.slane %v4866_v27, 6 }
 0x46b   :  { %v1230_v21 = vsel %vm1227_vm9, %v1228_v33, %v1229_v24  ;;  %v1235_v23 = vsel %vm1227_vm9, %v1229_v24, 0.0 }
 0x46c   :  { %v1297_v13 = vmul.f32 %v1290_v1, %v1235_v23 }
 0x46e   :  { %v1305_v44 = vmul.f32 %v3555_v37, %v1297_v13 }
 0x518   :  { %v2306_v48 = vpop.f32.mrb[22].mxu0 }
 0x519   :  { %v3915_v22 = vpop.f32.mrb[23].mxu0  ;;  %3953 = vmatprep.mubr.msk.f32.mxu0 %vm1204_vm2, %v2306_v48  ;;  %v1351_v48 = vsel %vm1348_vm3, %v1349_v39, %v1350_v42 }
 0x51a   :  { %v1389_v22 = vrot.slane %v3561_v19, 4 }
 0x51c   :  { %v2379_v53 = vpop.f32.mrb[18].mxu1  ;;  %v1396_v11 = vmul.f32 %v1389_v22, %v1235_v23 }
 0x51d   :  { %v3920_v32 = vpop.f32.mrb[19].mxu1 }
 0x51e   :  { %v1269_v32 = vmul.f32 %v3550_v51, %v1234_v9  ;;  %v1404_v24 = vmul.f32 %v3562_v15, %v1396_v11 }
 0x520   :  { %v2452_v49 = vpop.f32.mrb[24].mxu0  ;;  %v1411_v13 = vrot.slane %v1404_v24, 4  ;;  %v3600_v24 = vld [vmem:[%s5021_s15] ss:$0 sm:$0xff] }
 0x521   :  { %v2525_v50 = vpop.f32.mrb[20].mxu1  ;;  %v3925_v55 = vpop.f32.mrb[25].mxu0 }
 0x522   :  { %v3930_v56 = vpop.f32.mrb[21].mxu1  ;;  %v3552_v55 = vld [vmem:[%s5017_s11] ss:$0 sm:$0xff] }
 0x523   :  { %v1270_v56 = vmul.f32 %v3551_v45, %v1230_v21 }
 0x524   :  { %v2598_v52 = vpop.f32.mrb[26].mxu0 }
 0x525   :  { %v3935_v57 = vpop.f32.mrb[27].mxu0  ;;  %3954 = vmatmul.mubr.msk.f32.vlgmr.msra.gmra.mrb[30].mxu0 %vm1204_vm2, %v2598_v52  ;;  %v1277_v4 = vmul.f32 %v3552_v55, %v1270_v56 }
 0x526   :  { %3957 = vmatpush3.msra.mxu0 %v3590_v47  ;;  %3958 = vmatprep.mubr.msk.f32.mxu0 %vm1204_vm2, %v2379_v53  ;;  %v1303_v47 = vmul.f32 %v3555_v37, %v1295_v41  ;;  %v3556_v53 = vld [vmem:[%s5017_s11 + $0x2] ss:$0 sm:$0xff]  ;;  %v1357_v57 = vmul.f32 %v1350_v42, %v1235_v23 }
 0x527   :  { %3961 = vmatprep.subr.mxu0 %v3593_v54  ;;  %v1325_v38 = vmul.f32 %v3556_v53, %v1230_v21  ;;  %v1326_v52 = vmul.f32 %v3556_v53, %v1235_v23  ;;  %v1402_v23 = vmul.f32 %v3562_v15, %v1394_v18 }
 0x528   :  { %v2671_v59 = vpop.f32.mrb[22].mxu1 }
 0x529   :  { %v2744_v60 = vpop.f32.mrb[28].mxu0  ;;  %v3940_v61 = vpop.f32.mrb[23].mxu1  ;;  %v1332_v5 = vrot.slane %v1325_v38, 2  ;;  %v1334_v6 = vrot.slane %v1326_v52, 2 }
 0x52a   :  { %v3945_v62 = vpop.f32.mrb[29].mxu0  ;;  %v1276_v61 = vmul.f32 %v3552_v55, %v1269_v32 }
 0x52b   :  { %v1324_v62 = vmul.f32 %v3556_v53, %v1234_v9  ;;  %v1335_v29 = vsel %vm1330_vm1, %v1332_v5, %v1334_v6  ;;  %v4181_v53 = vld [vmem:[%s5035_s23 + $0x8] sm:$0xff]  ;;  %v3218_v6 = vld [vmem:[%s5022_s16 + $0x18] sm:$0xff] }
 0x52c   :  { %v2817_v63 = vpop.f32.mrb[24].mxu1 }
 0x52d   :  { %v3950_v2 = vpop.f32.mrb[25].mxu1  ;;  %3959 = vmatmul.mubr.msk.f32.vlgmr.msra.gmra.mrb[30].mxu0 %vm1204_vm2, %v2671_v59  ;;  %v1310_v59 = vrot.slane %v1303_v47, 1  ;;  %v1331_v26 = vrot.slane %v1324_v62, 2 }
 0x52e   :  { %3962 = vmatpush3.msra.mxu0 %v3593_v54  ;;  %3963 = vmatprep.mubr.msk.f32.mxu0 %vm1204_vm2, %v2452_v49  ;;  %v1356_v54 = vmul.f32 %v1351_v48, %v1230_v21  ;;  %v3559_v2 = vld [vmem:[%s5017_s11 + $0x3] ss:$0 sm:$0xff] }
 0x52f   :  { %3966 = vmatprep.subr.mxu0 %v3596_v0  ;;  %v1365_v10 = vmul.f32 %v3559_v2, %v1357_v57  ;;  %v1333_v33 = vsel %vm1330_vm1, %v1331_v26, %v1332_v5 }
 0x530   :  { %v1364_v8 = vmul.f32 %v3559_v2, %v1356_v54 }
 0x531   :  { %v1373_v31 = vrot.slane %v1365_v10, 3  ;;  %v3310_v10 = vld [vmem:[%s5024_s18 + $0x8] sm:$0xff] }
 0x532   :  { %v1371_v14 = vrot.slane %v1364_v8, 3  ;;  %v3309_v8 = vld [vmem:[%s5024_s18] sm:$0xff] }
 0x534   :  { %v1374_v35 = vsel %vm1369_vm6, %v1371_v14, %v1373_v31 }
 0x535   :  { %3964 = vmatmul.mubr.msk.f32.vlgmr.msra.gmra.mrb[30].mxu0 %vm1204_vm2, %v2744_v60  ;;  %v1390_v60 = vsel %vm1387_vm4, %v1388_v46, %v1389_v22 }
 0x536   :  { %3967 = vmatpush3.msra.mxu0 %v3596_v0  ;;  %3968 = vmatprep.mubr.msk.f32.mxu0 %vm1204_vm2, %v2525_v50  ;;  %v1313_v50 = vrot.slane %v1305_v44, 1  ;;  %v1395_v25 = vmul.f32 %v1390_v60, %v1230_v21  ;;  %v3589_v44 = vld [vmem:[%s5019_s13] ss:$0 sm:$0xff] }
 0x53d   :  { %3969 = vmatmul.mubr.msk.f32.vlgmr.msra.gmra.mrb[30].mxu0 %vm1204_vm2, %v2817_v63  ;;  %vm1288_vm2 = vcmask 1040384   ;;  %v1355_v63 = vmul.f32 %v1349_v39, %v1234_v9  ;;  %v1408_v9 = vrot.slane %v1402_v23, 4 }
 0x53e   :  { %v1291_v34 = vsel %vm1288_vm2, %v1289_v17, %v1290_v1  ;;  %v1403_v1 = vmul.f32 %v3562_v15, %v1395_v25  ;;  %v4105_v25 = vpack.c.bf16 %v3310_v10, %v3309_v8 }
 0x53f   :  { %v1296_v36 = vmul.f32 %v1291_v34, %v1230_v21  ;;  %v1363_v16 = vmul.f32 %v3559_v2, %v1355_v63  ;;  %v3216_v2 = vld [vmem:[%s5022_s16 + $0x8] sm:$0xff] }
 0x541   :  { %v1304_v43 = vmul.f32 %v3555_v37, %v1296_v36  ;;  %v1370_v21 = vrot.slane %v1363_v16, 3  ;;  %v1409_v36 = vrot.slane %v1403_v1, 4 }
 0x543   :  { %v1311_v49 = vrot.slane %v1304_v43, 1  ;;  %v1372_v37 = vsel %vm1369_vm6, %v1370_v21, %v1371_v14  ;;  %v1412_v41 = vsel %vm1387_vm4, %v1409_v36, %v1411_v13  ;;  %v1410_v19 = vsel %vm1387_vm4, %v1408_v9, %v1409_v36  ;;  %v3312_v21 = vld [vmem:[%s5024_s18 + $0x18] sm:$0xff]  ;;  %v3313_v13 = vld [vmem:[%s5024_s18 + $0x20] sm:$0xff] }
 0x544   :  { %v3316_v9 = vld [vmem:[%s5024_s18 + $0x38] sm:$0xff] }
 0x545   :  { %v1314_v0 = vsel %vm1309_vm5, %v1311_v49, %v1313_v50  ;;  %v1312_v7 = vsel %vm1309_vm5, %v1310_v59, %v1311_v49  ;;  %v4182_v50 = vld [vmem:[%s5035_s23] sm:$0xff] }
 0x546   :  { %v1318_v12 = vadd.f32 %v1314_v0, %v1277_v4  ;;  %v1317_v28 = vadd.f32 %v1312_v7, %v1276_v61  ;;  %v3215_v0 = vld [vmem:[%s5022_s16] sm:$0xff]  ;;  %v3217_v4 = vld [vmem:[%s5022_s16 + $0x10] sm:$0xff] }
 0x547   :  { %v4097_v5 = vpack.c.bf16 %v3216_v2, %v3215_v0  ;;  %v4101_v7 = vpack.c.bf16 %v3218_v6, %v3217_v4 }
 0x548   :  { %v1339_v17 = vadd.f32 %v1335_v29, %v1318_v12  ;;  %v1338_v34 = vadd.f32 %v1333_v33, %v1317_v28  ;;  %v3599_v29 = vld [vmem:[%s5020_s14] ss:$0 sm:$0xff] }
 0x549   :  { %4098 = vmatprep.subr.bf16.mxu1 %v4097_v5 }
 0x54a   :  { %v1378_v30 = vadd.f32 %v1374_v35, %v1339_v17  ;;  %v1377_v40 = vadd.f32 %v1372_v37, %v1338_v34  ;;  %4100 = vmatpush3.bf16.msra.mxu1 %v4097_v5  ;;  %v3311_v34 = vld [vmem:[%s5024_s18 + $0x10] sm:$0xff] }
 0x54b   :  { %4102 = vmatprep.subr.bf16.mxu1 %v4101_v7  ;;  %v4109_v36 = vpack.c.bf16 %v3312_v21, %v3311_v34 }
 0x54c   :  { %v1416_v42 = vadd.f32 %v1412_v41, %v1378_v30  ;;  %v1415_v43 = vadd.f32 %v1410_v19, %v1377_v40  ;;  %v3314_v30 = vld [vmem:[%s5024_s18 + $0x28] sm:$0xff]  ;;  %v3315_v40 = vld [vmem:[%s5024_s18 + $0x30] sm:$0xff] }
 0x54d   :  { %v4113_v37 = vpack.c.bf16 %v3314_v30, %v3313_v13  ;;  %v4117_v41 = vpack.c.bf16 %v3316_v9, %v3315_v40 }
 0x54e   :  { %v1418_v51 = vadd.f32 %v1416_v42, %v4866_v27  ;;  %v1417_v45 = vadd.f32 %v1415_v43, %v4870_v20  ;;  %4104 = vmatpush3.bf16.msra.mxu1 %v4101_v7  ;;  %v3601_v42 = vld [vmem:[%s5023_s17] ss:$0 sm:$0xff]  ;;  %s4213_s17 = smov 32  }
 0x54f   :  { %4106 = vmatprep.subr.bf16.mxu1 %v4105_v25 }
 0x550   :  { %v1420_v22 = vmul.f32 %v1418_v51, %v4855_v3  ;;  %v1419_v49 = vmul.f32 %v1417_v45, %v4863_v58 }
 0x610   :  { %v3970_v39 = vpop.f32.mrb[30].mxu0 }
 0x611   :  { %v4121_v46 = vadd.f32 %v3970_v39, %v3589_v44  ;;  %v3156_v47 = vpop.f32.mrb[31].mxu0 }
 0x612   :  { %v4122_v48 = vadd.f32 %v3589_v44, %v3156_v47 }
 0x613   :  { %v3168_v32 = vadd.f32 %v4181_v53, %v4121_v46  ;;  %v3604_v46 = vld [vmem:[%s5025_s19] ss:$0 sm:$0xff]  ;;  %s4216_s19 = smov [#allocation2]  }
 0x614   :  { %v3167_v27 = vadd.f32 %v4182_v50, %v4122_v48  ;;  %s3459_s8 = sshll.u32 %s4216_s19, 4  ;;  %s3460_s8 = int_to_ptr.vmem [resolvable:$true] %s3459_s8 }
 0x615   :  { %v4921_v55 = vadd.f32 %v3168_v32, %v1420_v22  ;;  %s4183_s22 = scalar_lea.vmem %s3460_s8, 64  ;;  %p4188_p1 = scmp.lt.s32.totalorder %s3460_s8, %s3460_s8 }
 0x616   :  { %v4923_v20 = vadd.f32 %v3167_v27, %v1419_v49  ;;  %p4184_p0 = scmp.ne.s32.totalorder %s3460_s8, %s4183_s22  ;;  %p4189_p2 = scmp.lt.s32.totalorder %s4183_s22, %s4183_s22 }
 0x617   :  { %v3176_v56 = vsel %vm80_vm0, %v4921_v55, 0.0 }
 0x618   :  { %3177 = vadd.xlane.f32.xlu0 %v3176_v56  ;;  %v3173_v3 = vsel %vm80_vm0, %v4923_v20, 0.0  ;;  %p4190_p3 = por %p4189_p2, %p4188_p1 }
 0x619   :  { %3174 = vadd.xlane.f32.xlu1 %v3173_v3 }
 0x61a   :  { %p4191_p4 = pnand %p4190_p3, %p4184_p0 }
 0x6a5   :  { %v3178_v38 = vpop.xlane.xlu0 %3177 }
 0x6a6   :  { %v3180_v52 = vmul.f32 0.03125, %v3178_v38  ;;  %v3175_v58 = vpop.xlane.xlu1 %3174 }
 0x6a7   :  { %v3179_v54 = vmul.f32 0.03125, %v3175_v58 }
 0x6a8   :  { %v3182_v57 = vsub.f32 %v4921_v55, %v3180_v52 }
 0x6a9   :  { %v3181_v59 = vsub.f32 %v4923_v20, %v3179_v54 }
 0x6aa   :  { %v3184_v60 = vmul.f32 %v3182_v57, %v3182_v57 }
 0x6ab   :  { %v3183_v61 = vmul.f32 %v3181_v59, %v3181_v59 }
 0x6ac   :  { %v3188_v62 = vsel %vm80_vm0, %v3184_v60, 0.0 }
 0x6ad   :  { %3189 = vadd.xlane.f32.xlu1 %v3188_v62  ;;  %v3185_v63 = vsel %vm80_vm0, %v3183_v61, 0.0 }
 0x6ae   :  { %3186 = vadd.xlane.f32.xlu0 %v3185_v63 }
 0x73a   :  { %v3190_v11 = vpop.xlane.xlu1 %3189 }
 0x73b   :  { %v3192_v12 = vmul.f32 0.03125, %v3190_v11  ;;  %v3187_v28 = vpop.xlane.xlu0 %3186 }
 0x73c   :  { %v3191_v15 = vmul.f32 0.03125, %v3187_v28 }
 0x73d   :  { %v3194_v26 = vadd.f32 1e-12, %v3192_v12 }
 0x73e   :  { %v3193_v16 = vadd.f32 1e-12, %v3191_v15 }
 0x73f   :  { %4177 = vrsqrt.f32 %v3194_v26 }
 0x740   :  { %4179 = vrsqrt.f32 %v3193_v16 }
 0x749   :  { %v4178_v18 = vpop.eup %4177 }
 0x74a   :  { %v4180_v14 = vpop.eup %4179  ;;  %v3198_v31 = vmul.f32 %v4178_v18, %v3182_v57 }
 0x74b   :  { %v3197_v1 = vmul.f32 %v4180_v14, %v3181_v59 }
 0x74c   :  { %v3206_v17 = vmul.f32 %v3599_v29, %v3198_v31 }
 0x74d   :  { %v3205_v33 = vmul.f32 %v3599_v29, %v3197_v1 }
 0x74e   :  { %v3214_v35 = vadd.f32 %v3600_v24, %v3206_v17 }
 0x74f   :  { %v3213_v23 = vadd.f32 %v3600_v24, %v3205_v33 }
 0x751   :  { %3979 = vmatprep.mubr.msk.f32.mxu1 %vm80_vm0, %v3213_v23 }
 0x752   :  { %3980 = vmatmul.mubr.msk.f32.vlgmr.msra.gmra.mrb[26].mxu1 %vm80_vm0, %v3214_v35 }
 0x753   :  { %4108 = vmatpush3.bf16.msra.mxu1 %v4105_v25 }
 0x754   :  { %4110 = vmatprep.subr.bf16.mxu1 %v4109_v36 }
 0x757   :  { %4112 = vmatpush3.bf16.msra.mxu1 %v4109_v36 }
 0x758   :  { %4114 = vmatprep.subr.bf16.mxu1 %v4113_v37 }
 0x75b   :  { %4116 = vmatpush3.bf16.msra.mxu1 %v4113_v37 }
 0x75c   :  { %4118 = vmatprep.subr.bf16.mxu1 %v4117_v41 }
 0x75f   :  { %4120 = vmatpush3.bf16.msra.mxu1 %v4117_v41 }
 0x825   :  { %v3981_v19 = vpop.f32.mrb[26].mxu1 }
 0x826   :  { %v3304_v43 = vadd.f32 %v3981_v19, %v3601_v42  ;;  %v3298_v44 = vpop.f32.mrb[27].mxu1 }
 0x827   :  { %v3299_v51 = vadd.f32 %v3601_v42, %v3298_v44 }
 0x828   :  { %v3308_v45 = vmax.f32 %v3304_v43, 0.0 }
 0x829   :  { %v3307_v39 = vmax.f32 %v3299_v51, 0.0 }
 0x82b   :  { %3998 = vmatprep.mubr.msk.f32.mxu1 %vm3324_vm7, %v3307_v39 }
 0x82c   :  { %3999 = vmatmul.mubr.msk.f32.vlgmr.msra.gmra.mrb[28].mxu1 %vm3324_vm7, %v3308_v45 }
 0x8ff   :  { %v4000_v47 = vpop.f32.mrb[28].mxu1 }
 0x900   :  { %v3403_v48 = vadd.f32 %v4000_v47, %v3604_v46  ;;  %v3397_v22 = vpop.f32.mrb[29].mxu1 }
 0x901   :  { %v3398_v53 = vadd.f32 %v3604_v46, %v3397_v22 }
 0x902   :  { %v3407_v32 = vadd.f32 %v3403_v48, %v4921_v55 }
 0x903   :  { %v3406_v49 = vadd.f32 %v3398_v53, %v4923_v20 }
 0x904   :  { %v3426_v50 = vrot.slane %v3407_v32, 1  ;;  %v3430_v38 = vrot.slane %v3407_v32, 2  ;;  %v3434_v52 = vrot.slane %v3407_v32, 3 }
 0x905   :  { %v3409_v27 = vrot.slane %v3406_v49, 1  ;;  %v3413_v56 = vrot.slane %v3406_v49, 2  ;;  %v3417_v3 = vrot.slane %v3406_v49, 3 }
 0x906   :  { %3427 = vrot.lane.b32.xlu1 %v3426_v50, %s4213_s17 }
 0x907   :  { %3410 = vrot.lane.b32.xlu0 %v3409_v27, %s4213_s17 }
 0x90a   :  { %3414 = vrot.lane.b32.xlu1 %v3413_v56, %s4214_s21 }
 0x90b   :  { %3418 = vrot.lane.b32.xlu0 %v3417_v3, %s4215_s1 }
 0x90e   :  { %3431 = vrot.lane.b32.xlu1 %v3430_v38, %s4214_s21 }
 0x90f   :  { %3435 = vrot.lane.b32.xlu0 %v3434_v52, %s4215_s1 }
 0x978   :  { %v3428_v58 = vpop.permute.xlu1 %3427 }
 0x979   :  { %v3411_v54 = vpop.permute.xlu0 %3410  ;;  %v3438_v61 = vsel %vm80_vm0, %v3407_v32, %v3428_v58 }
 0x97a   :  { %v3421_v55 = vsel %vm80_vm0, %v3406_v49, %v3411_v54 }
 0x97c   :  { %v3415_v20 = vpop.permute.xlu1 %3414 }
 0x97d   :  { %v3422_v57 = vsel %vm3324_vm7, %v3421_v55, %v3415_v20  ;;  %v3419_v59 = vpop.permute.xlu0 %3418 }
 0x97e   :  { %v3424_v60 = vsel %vm3423_vm8, %v3422_v57, %v3419_v59 }
 0x97f   :  { %v3442_v62 = vrot.slane %v3424_v60, 3 }
 0x980   :  { %v3432_v63 = vpop.permute.xlu1 %3431 }
 0x981   :  { %v3439_v0 = vsel %vm3324_vm7, %v3438_v61, %v3432_v63  ;;  %v3436_v2 = vpop.permute.xlu0 %3435  ;;  %v3449_v7 = vsel %vm1288_vm2, %v3424_v60, %v3442_v62 }
 0x982   :  { %v3440_v4 = vsel %vm3423_vm8, %v3439_v0, %v3436_v2 }
 0x983   :  { %v3445_v5 = vrot.slane %v3440_v4, 6  ;;  %v3447_v6 = vrot.slane %v3440_v4, 1 }
 0x985   :  { %v3450_v8 = vsel %vm1227_vm9, %v3449_v7, %v3445_v5 }
 0x986   :  { %v3451_v10 = vsel %vm1348_vm3, %v3450_v8, %v3447_v6 }
 0x987   :  { %3452 = vst [vmem:[#allocation2] sm:$0xf] %v3451_v10 }
 0x988   :  { %4194 = shalt.err (!%p4191_p4)
}
 0x989   :  { %s4195_s9 = scalar_lea.hbm %s5026_s20, 64 }
 0x98a   :  { %p4196_p5 = scmp.ne.s32.totalorder %s5026_s20, %s4195_s9  ;;  %p4199_p6 = scmp.lt.u32.totalorder %s4195_s9, %s5026_s20 }
 0x98c   :  { %p4201_p7 = pnand %p4199_p6, %p4196_p5 }
 0x98e   :  { %4204 = shalt.err (!%p4201_p7)
}
 0x98f   :  { %3462 = dma.vmem_to_hbm [thread:$0]  %s3460_s8, 64, %s5026_s20, [#allocation3]  }
 0x990   :  { %4205 = dma.done.wait [#allocation3], 64  }
 0x991   :  { %4206 = vsyncadd [#allocation3], 4294967232 }
 0x992   :  { %3466 = vsyncpa [#allocation3], 1 }

</bundles_post_ra>
